<compile_context>
chip_gen: v5e
topology: v5e:2x2
jax: 0.10.0
libtpu: 0.0.40
codegen_flags: <defaults>
</compile_context>

<pallas_src>
import math

import jax
import jax.numpy as jnp
from jax.experimental import pallas as pl
from jax.experimental.pallas import tpu as pltpu


# ----------------------------------------------------------------------------
# In-kernel helpers
# ----------------------------------------------------------------------------
def _dual_layernorm(y, hi_mask, inv_dh, g, b, eps=1e-5):
    """LayerNorm applied independently to the two Dh-wide halves of each row.

    y       : (tok, D2) f32, each row = [p2=0 channels | p2=1 channels]
    hi_mask : (tok, D2) bool, True on lanes >= Dh
    g, b    : (1, D2) gamma/beta, pre-tiled [g|g], [b|b]
    Mask-based per-half statistics avoid Dh-granular lane slices / concats,
    which are lane-unaligned for Dh < 128 and would force XLU relayouts.
    """
    zero = jnp.zeros_like(y)
    s_lo = jnp.sum(jnp.where(hi_mask, zero, y), axis=-1, keepdims=True)
    s_hi = jnp.sum(jnp.where(hi_mask, y, zero), axis=-1, keepdims=True)
    mean = jnp.where(hi_mask, s_hi, s_lo) * inv_dh
    cen = y - mean
    sq = cen * cen
    v_lo = jnp.sum(jnp.where(hi_mask, zero, sq), axis=-1, keepdims=True)
    v_hi = jnp.sum(jnp.where(hi_mask, sq, zero), axis=-1, keepdims=True)
    var = jnp.where(hi_mask, v_hi, v_lo) * inv_dh
    return cen * jax.lax.rsqrt(var + eps) * g + b


def _patchup_kernel(x_ref, e_ref, wc_ref, w2d_ref, bc_ref,
                    g2_ref, bt2_ref, g_ref, bt_ref, o_ref):
    TH, _, W, D2 = e_ref.shape            # D2 = 2*Dh = dim
    Dh = D2 // 2
    tok = TH * W                          # input tokens handled this step
    inv_dh = 1.0 / Dh

    x = x_ref[...]                        # (tok, dim)
    w2d = w2d_ref[...]                    # (D2, D2) = block-diag(w2a, w2a)
    g2 = g2_ref[...].astype(jnp.float32)
    bt2 = bt2_ref[...].astype(jnp.float32)
    g = g_ref[...].astype(jnp.float32)
    bt = bt_ref[...].astype(jnp.float32)

    lane = jax.lax.broadcasted_iota(jnp.int32, (tok, D2), 1)
    hi_mask = lane >= Dh                  # lanes of the p2 = 1 half

    for p1 in range(2):                   # static unroll over the upsampled rows
        # linear1 + pixel-shuffle + linear2(x-half): one wide MXU matmul.
        y = jnp.dot(x, wc_ref[p1], preferred_element_type=jnp.float32)
        y = y + bc_ref[p1].astype(jnp.float32)                        # (tok, D2)
        # linear2(encoder-half): both p2 chunks with one full-width MXU matmul.
        e_p1 = e_ref[:, p1, :, :].reshape(tok, D2)
        y = y + jnp.dot(e_p1, w2d, preferred_element_type=jnp.float32)
        y = _dual_layernorm(y, hi_mask, inv_dh, g2, bt2)              # self.norm2
        y = _dual_layernorm(y, hi_mask, inv_dh, g, bt)                # self.norm
        # y is already a contiguous [p2=0 | p2=1] slab -> direct store, no concat.
        o_ref[:, p1, :, :] = y.reshape(TH, W, D2).astype(o_ref.dtype)


# ----------------------------------------------------------------------------
# Generation-aware tile / VMEM-limit derivation
# ----------------------------------------------------------------------------
def _sublane_pack(dtype):
    # 8 rows per sublane tile for 4-byte dtypes, 16 for bf16, 32 for int8/fp8.
    return max(8, 32 // jnp.dtype(dtype).itemsize)


def _vmem_capacity_bytes():
    try:
        return int(pltpu.get_tpu_info().vmem_capacity_bytes)
    except Exception:
        return 64 * 1024 * 1024            # conservative (v7x per-TC capacity)


def _derive_tiling(H, W, dim, act_dtype, weight_dtype, max_tokens=4096):
    """Largest row tile TH (divisor of H) whose working set fits the VMEM budget."""
    isz = jnp.dtype(act_dtype).itemsize
    wsz = jnp.dtype(weight_dtype).itemsize
    pack = _sublane_pack(act_dtype)
    cap = _vmem_capacity_bytes()
    budget = int(cap * 0.70)               # leave headroom for compiler scratch

    lane = 128 * pl.cdiv(dim, 128)         # lane padding for dim < 128

    def working_set(tokx):
        # x + e + out blocks, each double-buffered by the pipeline.
        blocks = 2 * (tokx * lane + 2 * tokx * lane + 2 * tokx * lane) * isz
        interm = 4 * tokx * lane * 4       # live f32 temporaries (estimate)
        weights = 3 * dim * lane * wsz + 10 * lane * 4   # wc + w2d (x1 buffer) + vecs
        return blocks + interm + weights

    best = None
    for th in range(1, H + 1):             # ascending -> keeps largest feasible
        if H % th:
            continue
        tokx = th * W
        if (tokx % pack) and th != H:      # dtype-aware sublane legality
            continue
        if tokx > max_tokens:
            continue
        if working_set(tokx) <= budget:
            best = th
    if best is None:                       # fall back to smallest legal tile
        for th in range(1, H + 1):
            if H % th == 0 and (th * W) % pack == 0:
                best = th
                break
        best = best if best is not None else H

    vmem_limit = int(min(cap * 0.9,
                         max(32 * 1024 * 1024, 2 * working_set(best * W))))
    return best, vmem_limit


# ----------------------------------------------------------------------------
# One-time parameter preparation (hoisted out of forward)
# ----------------------------------------------------------------------------
def prepare_patchup_params(params, compute_dtype=None):
    """Compose PatchUp weights once.

    compute_dtype: dtype for the MXU operands (pass the activation dtype, e.g.
    jnp.bfloat16, to get the MXU fast path); accumulation is always f32.
    """
    w1, b1 = params["w1"], params["b1"]        # (dim, 2*dim), (2*dim,)
    w2, b2 = params["w2"], params["b2"]        # (dim, dim//2), (dim//2,)
    dim = w1.shape[0]
    Dh = dim // 2
    D2 = 2 * Dh
    if compute_dtype is None:
        compute_dtype = w1.dtype

    w2a, w2b = w2[:Dh, :], w2[Dh:, :]          # encoder half / shuffled half

    def col(q):                                # q = 2*p1 + p2 pixel-shuffle chunk
        return w1[:, q * Dh:(q + 1) * Dh] @ w2b

    wc = jnp.stack([jnp.concatenate([col(2 * p1), col(2 * p1 + 1)], axis=-1)
                    for p1 in range(2)], axis=0)                       # (2, dim, D2)
    bc = jnp.stack([jnp.concatenate(
        [b1[q * Dh:(q + 1) * Dh] @ w2b + b2 for q in (2 * p1, 2 * p1 + 1)],
        axis=-1).reshape(1, D2) for p1 in range(2)], axis=0)           # (2, 1, D2)
    w2d = (jnp.zeros((D2, D2), w2a.dtype)
           .at[:Dh, :Dh].set(w2a)
           .at[Dh:, Dh:].set(w2a))                                     # block-diag

    def tile2(v):                              # gamma/beta tiled for both p2 halves
        return jnp.concatenate([v, v]).reshape(1, D2)

    return {
        "wc": wc.astype(compute_dtype),
        "w2d": w2d.astype(compute_dtype),
        "bc": bc.astype(jnp.float32),
        "g2": tile2(params["g_norm2"]).astype(jnp.float32),
        "bt2": tile2(params["b_norm2"]).astype(jnp.float32),
        "g": tile2(params["g_norm"]).astype(jnp.float32),
        "bt": tile2(params["b_norm"]).astype(jnp.float32),
    }


# ----------------------------------------------------------------------------
# PatchUp forward: one pallas_call, no intermediate HBM tensors.
# ----------------------------------------------------------------------------
def patch_up_forward(prepared, x, encoder_output):
    B, L, dim = x.shape
    H = int(math.isqrt(L))
    W = H
    assert H * W == L, "PatchUp expects a square token grid"
    Dh = dim // 2
    D2 = 2 * Dh

    # Weights in the activation dtype -> MXU fast path; f32 accumulation inside.
    wc = prepared["wc"].astype(x.dtype)
    w2d = prepared["w2d"].astype(x.dtype)

    TH, vmem_limit = _derive_tiling(H, W, dim, x.dtype, wc.dtype)
    TOKX = TH * W                      # input tokens per grid step
    nb = H // TH
    G = B * nb                         # flat 1-D parallel grid

    # Pure (copy-free) reshape views.
    x3 = x.reshape(G, TOKX, dim)
    e4 = encoder_output.reshape(G * TH, 2, W, D2)

    dtype = x.dtype
    isz = jnp.dtype(dtype).itemsize
    flops = 8 * B * L * dim * dim
    bytes_accessed = int(
        isz * (B * L * dim)                                 # x
        + 2 * isz * (B * 4 * L * Dh)                        # encoder_output + out
        + jnp.dtype(wc.dtype).itemsize * 3 * dim * D2       # wc + block-diag
        + 4 * 8 * D2)                                       # biases + LN params

    def wspec(shape):
        # Constant-index, single-buffered (VMEM-resident) weight/bias block.
        return pl.BlockSpec(shape, lambda g: (0,) * len(shape),
                            pipeline_mode=pl.Buffered(1))

    out = pl.pallas_call(
        _patchup_kernel,
        out_shape=jax.ShapeDtypeStruct((G * TH, 2, W, D2), dtype),
        grid_spec=pltpu.PrefetchScalarGridSpec(
            num_scalar_prefetch=0,
            grid=(G,),
            in_specs=[
                # x tokens for TH spatial rows of one image
                pl.BlockSpec((None, TOKX, dim), lambda g: (g, 0, 0)),
                # matching encoder rows (both p1 upsampled rows, both p2 halves)
                pl.BlockSpec((TH, 2, W, D2), lambda g: (g, 0, 0, 0)),
                wspec((2, dim, D2)),     # composed x-weights, split per p1
                wspec((D2, D2)),         # block-diag(w2a, w2a)
                wspec((2, 1, D2)),       # composed bias, split per p1
                wspec((1, D2)),          # gamma  (norm2), tiled
                wspec((1, D2)),          # beta   (norm2), tiled
                wspec((1, D2)),          # gamma  (norm),  tiled
                wspec((1, D2)),          # beta   (norm),  tiled
            ],
            out_specs=pl.BlockSpec((TH, 2, W, D2), lambda g: (g, 0, 0, 0)),
        ),
        compiler_params=pltpu.CompilerParams(
            dimension_semantics=("parallel",),
            vmem_limit_bytes=vmem_limit),
        cost_estimate=pl.CostEstimate(
            flops=flops,
            transcendentals=8 * B * L,
            bytes_accessed=bytes_accessed),
    )(x3, e4, wc, w2d, prepared["bc"],
      prepared["g2"], prepared["bt2"], prepared["g"], prepared["bt"])

    # Pure reshape back to the module's (B, 4L, Dh) layout.
    return out.reshape(B, 4 * L, Dh)


# ----------------------------------------------------------------------------
# Parameters + pure-JAX reference (follows the PyTorch forward step by step)
# ----------------------------------------------------------------------------
def make_params(key, dim):
    ks = jax.random.split(key, 4)
    s = 1.0 / math.sqrt(dim)
    return {
        "w1": jax.random.uniform(ks[0], (dim, 2 * dim), jnp.float32, -s, s),
        "b1": jax.random.uniform(ks[1], (2 * dim,), jnp.float32, -s, s),
        "w2": jax.random.uniform(ks[2], (dim, dim // 2), jnp.float32, -s, s),
        "b2": jax.random.uniform(ks[3], (dim // 2,), jnp.float32, -s, s),
        "g_norm2": jnp.ones((dim // 2,), jnp.float32),
        "b_norm2": jnp.zeros((dim // 2,), jnp.float32),
        "g_norm": jnp.ones((dim // 2,), jnp.float32),
        "b_norm": jnp.zeros((dim // 2,), jnp.float32),
    }


def change_shape_ref(x):
    B, L, C = x.shape
    H = int(math.isqrt(L))
    W = H
    x = x.reshape(B, H, W, 2, 2, C // 4)          # (b, h, w, p1, p2, c)
    x = jnp.transpose(x, (0, 1, 3, 2, 4, 5))      # (b, h, p1, w, p2, c)
    return x.reshape(B, 4 * L, C // 4)


def _reference(params, x, encoder_output):
    h = x @ params["w1"] + params["b1"]
    h = change_shape_ref(h)
    h = jnp.concatenate([encoder_output, h], axis=-1)
    h = h @ params["w2"] + params["b2"]

    def ln(y, g, b):
        m = jnp.mean(y, -1, keepdims=True)
        v = jnp.mean(jnp.square(y - m), -1, keepdims=True)
        return (y - m) / jnp.sqrt(v + 1e-5) * g + b

    h = ln(h, params["g_norm2"], params["b_norm2"])
    return ln(h, params["g_norm"], params["b_norm"])


if __name__ == "__main__":
    B, H, W, dim = 2, 8, 8, 64                    # L = 8x8 spatial tokens
    L = H * W
    Dh = dim // 2

    key = jax.random.PRNGKey(0)
    kx, ke, kp = jax.random.split(key, 3)
    x = jax.random.normal(kx, (B, L, dim), jnp.float32)
    encoder_output = jax.random.normal(ke, (B, 4 * L, Dh), jnp.float32)
    params = make_params(kp, dim)
    # Activation dtype is f32 here; pass jnp.bfloat16 for bf16 deployments.
    prepared = prepare_patchup_params(params, compute_dtype=jnp.float32)

    out = jax.block_until_ready(
        jax.jit(patch_up_forward)(prepared, x, encoder_output))
    ref = _reference(params, x, encoder_output)

    assert out.shape == (B, 4 * L, Dh)
    max_err = float(jnp.max(jnp.abs(out - ref)))
    assert jnp.allclose(out, ref, atol=2e-4, rtol=2e-4), f"max abs err {max_err}"
    print("KERNEL_OK")
</pallas_src>

<mosaic_0001>
module attributes {stable_mosaic.version = 11 : i64} {
  func.func @_patchup_kernel(%arg0: i32, %arg1: memref<1x64x64xf32, #tpu.memory_space<vmem>>, %arg2: memref<8x2x8x64xf32, #tpu.memory_space<vmem>>, %arg3: memref<2x64x64xf32, #tpu.memory_space<vmem>>, %arg4: memref<64x64xf32, #tpu.memory_space<vmem>>, %arg5: memref<2x1x64xf32, #tpu.memory_space<vmem>>, %arg6: memref<1x64xf32, #tpu.memory_space<vmem>>, %arg7: memref<1x64xf32, #tpu.memory_space<vmem>>, %arg8: memref<1x64xf32, #tpu.memory_space<vmem>>, %arg9: memref<1x64xf32, #tpu.memory_space<vmem>>, %arg10: memref<8x2x8x64xf32, #tpu.memory_space<vmem>>) attributes {dimension_semantics = [#tpu.dimension_semantics<parallel>], iteration_bounds = array<i64: 2>, scalar_prefetch = 0 : i64, scratch_operands = 0 : i64, tpu.core_type = #tpu.core_type<tc>, window_params = [{transform_indices = @transform_0, window_bounds = array<i64: 1, 64, 64>}, {transform_indices = @transform_1, window_bounds = array<i64: 8, 2, 8, 64>}, {pipeline_mode = #tpu.pipeline_mode<synchronous>, transform_indices = @transform_2, window_bounds = array<i64: 2, 64, 64>}, {pipeline_mode = #tpu.pipeline_mode<synchronous>, transform_indices = @transform_3, window_bounds = array<i64: 64, 64>}, {pipeline_mode = #tpu.pipeline_mode<synchronous>, transform_indices = @transform_4, window_bounds = array<i64: 2, 1, 64>}, {pipeline_mode = #tpu.pipeline_mode<synchronous>, transform_indices = @transform_5, window_bounds = array<i64: 1, 64>}, {pipeline_mode = #tpu.pipeline_mode<synchronous>, transform_indices = @transform_6, window_bounds = array<i64: 1, 64>}, {pipeline_mode = #tpu.pipeline_mode<synchronous>, transform_indices = @transform_7, window_bounds = array<i64: 1, 64>}, {pipeline_mode = #tpu.pipeline_mode<synchronous>, transform_indices = @transform_8, window_bounds = array<i64: 1, 64>}, {transform_indices = @transform_9, window_bounds = array<i64: 8, 2, 8, 64>}]} {
    %c0 = arith.constant 0 : index
    %c0_0 = arith.constant 0 : index
    %c0_1 = arith.constant 0 : index
    %0 = vector.load %arg1[%c0, %c0_0, %c0_1] : memref<1x64x64xf32, #tpu.memory_space<vmem>>, vector<1x64x64xf32>
    %1 = vector.shape_cast %0 : vector<1x64x64xf32> to vector<64x64xf32>
    %c0_2 = arith.constant 0 : index
    %c0_3 = arith.constant 0 : index
    %2 = vector.load %arg4[%c0_2, %c0_3] : memref<64x64xf32, #tpu.memory_space<vmem>>, vector<64x64xf32>
    %c0_4 = arith.constant 0 : index
    %c0_5 = arith.constant 0 : index
    %3 = vector.load %arg6[%c0_4, %c0_5] : memref<1x64xf32, #tpu.memory_space<vmem>>, vector<1x64xf32>
    %c0_6 = arith.constant 0 : index
    %c0_7 = arith.constant 0 : index
    %4 = vector.load %arg7[%c0_6, %c0_7] : memref<1x64xf32, #tpu.memory_space<vmem>>, vector<1x64xf32>
    %c0_8 = arith.constant 0 : index
    %c0_9 = arith.constant 0 : index
    %5 = vector.load %arg8[%c0_8, %c0_9] : memref<1x64xf32, #tpu.memory_space<vmem>>, vector<1x64xf32>
    %c0_10 = arith.constant 0 : index
    %c0_11 = arith.constant 0 : index
    %6 = vector.load %arg9[%c0_10, %c0_11] : memref<1x64xf32, #tpu.memory_space<vmem>>, vector<1x64xf32>
    %7 = tpu.iota {dimensions = array<i32: 1>} : vector<64x64xi32>
    %c32_i32 = arith.constant 32 : i32
    %8 = vector.broadcast %c32_i32 : i32 to vector<64x64xi32>
    %9 = arith.cmpi sge, %7, %8 : vector<64x64xi32>
    %c0_12 = arith.constant 0 : index
    %c0_13 = arith.constant 0 : index
    %c0_14 = arith.constant 0 : index
    %10 = vector.load %arg3[%c0_12, %c0_13, %c0_14] : memref<2x64x64xf32, #tpu.memory_space<vmem>>, vector<1x64x64xf32>
    %11 = vector.shape_cast %10 : vector<1x64x64xf32> to vector<64x64xf32>
    %cst = arith.constant dense<0.000000e+00> : vector<64x64xf32>
    %12 = tpu.matmul %1, %11, %cst {dimension_numbers = #tpu.dot_dimension_numbers<[1], [0], [0], [1], [0, 0, 1, 1], [], []>} : vector<64x64xf32>, vector<64x64xf32>, vector<64x64xf32> -> vector<64x64xf32>
    %c0_15 = arith.constant 0 : index
    %c0_16 = arith.constant 0 : index
    %c0_17 = arith.constant 0 : index
    %13 = vector.load %arg5[%c0_15, %c0_16, %c0_17] : memref<2x1x64xf32, #tpu.memory_space<vmem>>, vector<1x1x64xf32>
    %14 = vector.shape_cast %13 : vector<1x1x64xf32> to vector<1x64xf32>
    %15 = vector.broadcast %14 : vector<1x64xf32> to vector<64x64xf32>
    %16 = arith.addf %12, %15 : vector<64x64xf32>
    %c0_18 = arith.constant 0 : index
    %c0_19 = arith.constant 0 : index
    %c0_20 = arith.constant 0 : index
    %c0_21 = arith.constant 0 : index
    %17 = vector.load %arg2[%c0_18, %c0_19, %c0_20, %c0_21] : memref<8x2x8x64xf32, #tpu.memory_space<vmem>>, vector<8x1x8x64xf32>
    %18 = vector.shape_cast %17 : vector<8x1x8x64xf32> to vector<8x8x64xf32>
    %19 = vector.shape_cast %18 : vector<8x8x64xf32> to vector<64x64xf32>
    %cst_22 = arith.constant dense<0.000000e+00> : vector<64x64xf32>
    %20 = tpu.matmul %19, %2, %cst_22 {dimension_numbers = #tpu.dot_dimension_numbers<[1], [0], [0], [1], [0, 0, 1, 1], [], []>} : vector<64x64xf32>, vector<64x64xf32>, vector<64x64xf32> -> vector<64x64xf32>
    %21 = arith.addf %16, %20 : vector<64x64xf32>
    %cst_23 = arith.constant 0.000000e+00 : f32
    %22 = vector.broadcast %cst_23 : f32 to vector<64x64xf32>
    %23 = arith.select %9, %22, %21 : vector<64x64xi1>, vector<64x64xf32>
    %cst_24 = arith.constant dense<0.000000e+00> : vector<64xf32>
    %24 = vector.multi_reduction <add>, %23, %cst_24 [1] : vector<64x64xf32> to vector<64xf32>
    %25 = vector.shape_cast %24 : vector<64xf32> to vector<64x1xf32>
    %26 = arith.select %9, %21, %22 : vector<64x64xi1>, vector<64x64xf32>
    %cst_25 = arith.constant dense<0.000000e+00> : vector<64xf32>
    %27 = vector.multi_reduction <add>, %26, %cst_25 [1] : vector<64x64xf32> to vector<64xf32>
    %28 = vector.shape_cast %27 : vector<64xf32> to vector<64x1xf32>
    %29 = vector.shape_cast %28 : vector<64x1xf32> to vector<64x1xf32>
    %30 = vector.broadcast %29 : vector<64x1xf32> to vector<64x64xf32>
    %31 = vector.shape_cast %25 : vector<64x1xf32> to vector<64x1xf32>
    %32 = vector.broadcast %31 : vector<64x1xf32> to vector<64x64xf32>
    %33 = arith.select %9, %30, %32 : vector<64x64xi1>, vector<64x64xf32>
    %cst_26 = arith.constant 3.125000e-02 : f32
    %34 = vector.broadcast %cst_26 : f32 to vector<64x64xf32>
    %35 = arith.mulf %33, %34 : vector<64x64xf32>
    %36 = arith.subf %21, %35 : vector<64x64xf32>
    %37 = arith.mulf %36, %36 : vector<64x64xf32>
    %38 = arith.select %9, %22, %37 : vector<64x64xi1>, vector<64x64xf32>
    %cst_27 = arith.constant dense<0.000000e+00> : vector<64xf32>
    %39 = vector.multi_reduction <add>, %38, %cst_27 [1] : vector<64x64xf32> to vector<64xf32>
    %40 = vector.shape_cast %39 : vector<64xf32> to vector<64x1xf32>
    %41 = arith.select %9, %37, %22 : vector<64x64xi1>, vector<64x64xf32>
    %cst_28 = arith.constant dense<0.000000e+00> : vector<64xf32>
    %42 = vector.multi_reduction <add>, %41, %cst_28 [1] : vector<64x64xf32> to vector<64xf32>
    %43 = vector.shape_cast %42 : vector<64xf32> to vector<64x1xf32>
    %44 = vector.shape_cast %43 : vector<64x1xf32> to vector<64x1xf32>
    %45 = vector.broadcast %44 : vector<64x1xf32> to vector<64x64xf32>
    %46 = vector.shape_cast %40 : vector<64x1xf32> to vector<64x1xf32>
    %47 = vector.broadcast %46 : vector<64x1xf32> to vector<64x64xf32>
    %48 = arith.select %9, %45, %47 : vector<64x64xi1>, vector<64x64xf32>
    %cst_29 = arith.constant 3.125000e-02 : f32
    %49 = vector.broadcast %cst_29 : f32 to vector<64x64xf32>
    %50 = arith.mulf %48, %49 : vector<64x64xf32>
    %cst_30 = arith.constant 9.99999974E-6 : f32
    %51 = vector.broadcast %cst_30 : f32 to vector<64x64xf32>
    %52 = arith.addf %50, %51 : vector<64x64xf32>
    %53 = math.rsqrt %52 : vector<64x64xf32>
    %54 = arith.mulf %36, %53 : vector<64x64xf32>
    %55 = vector.broadcast %3 : vector<1x64xf32> to vector<64x64xf32>
    %56 = arith.mulf %54, %55 : vector<64x64xf32>
    %57 = vector.broadcast %4 : vector<1x64xf32> to vector<64x64xf32>
    %58 = arith.addf %56, %57 : vector<64x64xf32>
    %cst_31 = arith.constant 0.000000e+00 : f32
    %59 = vector.broadcast %cst_31 : f32 to vector<64x64xf32>
    %60 = arith.select %9, %59, %58 : vector<64x64xi1>, vector<64x64xf32>
    %cst_32 = arith.constant dense<0.000000e+00> : vector<64xf32>
    %61 = vector.multi_reduction <add>, %60, %cst_32 [1] : vector<64x64xf32> to vector<64xf32>
    %62 = vector.shape_cast %61 : vector<64xf32> to vector<64x1xf32>
    %63 = arith.select %9, %58, %59 : vector<64x64xi1>, vector<64x64xf32>
    %cst_33 = arith.constant dense<0.000000e+00> : vector<64xf32>
    %64 = vector.multi_reduction <add>, %63, %cst_33 [1] : vector<64x64xf32> to vector<64xf32>
    %65 = vector.shape_cast %64 : vector<64xf32> to vector<64x1xf32>
    %66 = vector.shape_cast %65 : vector<64x1xf32> to vector<64x1xf32>
    %67 = vector.broadcast %66 : vector<64x1xf32> to vector<64x64xf32>
    %68 = vector.shape_cast %62 : vector<64x1xf32> to vector<64x1xf32>
    %69 = vector.broadcast %68 : vector<64x1xf32> to vector<64x64xf32>
    %70 = arith.select %9, %67, %69 : vector<64x64xi1>, vector<64x64xf32>
    %cst_34 = arith.constant 3.125000e-02 : f32
    %71 = vector.broadcast %cst_34 : f32 to vector<64x64xf32>
    %72 = arith.mulf %70, %71 : vector<64x64xf32>
    %73 = arith.subf %58, %72 : vector<64x64xf32>
    %74 = arith.mulf %73, %73 : vector<64x64xf32>
    %75 = arith.select %9, %59, %74 : vector<64x64xi1>, vector<64x64xf32>
    %cst_35 = arith.constant dense<0.000000e+00> : vector<64xf32>
    %76 = vector.multi_reduction <add>, %75, %cst_35 [1] : vector<64x64xf32> to vector<64xf32>
    %77 = vector.shape_cast %76 : vector<64xf32> to vector<64x1xf32>
    %78 = arith.select %9, %74, %59 : vector<64x64xi1>, vector<64x64xf32>
    %cst_36 = arith.constant dense<0.000000e+00> : vector<64xf32>
    %79 = vector.multi_reduction <add>, %78, %cst_36 [1] : vector<64x64xf32> to vector<64xf32>
    %80 = vector.shape_cast %79 : vector<64xf32> to vector<64x1xf32>
    %81 = vector.shape_cast %80 : vector<64x1xf32> to vector<64x1xf32>
    %82 = vector.broadcast %81 : vector<64x1xf32> to vector<64x64xf32>
    %83 = vector.shape_cast %77 : vector<64x1xf32> to vector<64x1xf32>
    %84 = vector.broadcast %83 : vector<64x1xf32> to vector<64x64xf32>
    %85 = arith.select %9, %82, %84 : vector<64x64xi1>, vector<64x64xf32>
    %cst_37 = arith.constant 3.125000e-02 : f32
    %86 = vector.broadcast %cst_37 : f32 to vector<64x64xf32>
    %87 = arith.mulf %85, %86 : vector<64x64xf32>
    %cst_38 = arith.constant 9.99999974E-6 : f32
    %88 = vector.broadcast %cst_38 : f32 to vector<64x64xf32>
    %89 = arith.addf %87, %88 : vector<64x64xf32>
    %90 = math.rsqrt %89 : vector<64x64xf32>
    %91 = arith.mulf %73, %90 : vector<64x64xf32>
    %92 = vector.broadcast %5 : vector<1x64xf32> to vector<64x64xf32>
    %93 = arith.mulf %91, %92 : vector<64x64xf32>
    %94 = vector.broadcast %6 : vector<1x64xf32> to vector<64x64xf32>
    %95 = arith.addf %93, %94 : vector<64x64xf32>
    %96 = vector.shape_cast %95 : vector<64x64xf32> to vector<8x8x64xf32>
    %c0_39 = arith.constant 0 : index
    %c0_40 = arith.constant 0 : index
    %c0_41 = arith.constant 0 : index
    %c0_42 = arith.constant 0 : index
    %97 = vector.load %arg10[%c0_39, %c0_40, %c0_41, %c0_42] : memref<8x2x8x64xf32, #tpu.memory_space<vmem>>, vector<8x1x8x64xf32>
    %98 = vector.shape_cast %97 : vector<8x1x8x64xf32> to vector<8x8x64xf32>
    %99 = vector.shape_cast %96 : vector<8x8x64xf32> to vector<8x1x8x64xf32>
    tpu.vector_store %arg10[%c0_39, %c0_40, %c0_41, %c0_42], %99 {strides = array<i32>} : memref<8x2x8x64xf32, #tpu.memory_space<vmem>>, vector<8x1x8x64xf32>,
    %c1 = arith.constant 1 : index
    %c0_43 = arith.constant 0 : index
    %c0_44 = arith.constant 0 : index
    %100 = vector.load %arg3[%c1, %c0_43, %c0_44] : memref<2x64x64xf32, #tpu.memory_space<vmem>>, vector<1x64x64xf32>
    %101 = vector.shape_cast %100 : vector<1x64x64xf32> to vector<64x64xf32>
    %cst_45 = arith.constant dense<0.000000e+00> : vector<64x64xf32>
    %102 = tpu.matmul %1, %101, %cst_45 {dimension_numbers = #tpu.dot_dimension_numbers<[1], [0], [0], [1], [0, 0, 1, 1], [], []>} : vector<64x64xf32>, vector<64x64xf32>, vector<64x64xf32> -> vector<64x64xf32>
    %c1_46 = arith.constant 1 : index
    %c0_47 = arith.constant 0 : index
    %c0_48 = arith.constant 0 : index
    %103 = vector.load %arg5[%c1_46, %c0_47, %c0_48] : memref<2x1x64xf32, #tpu.memory_space<vmem>>, vector<1x1x64xf32>
    %104 = vector.shape_cast %103 : vector<1x1x64xf32> to vector<1x64xf32>
    %105 = vector.broadcast %104 : vector<1x64xf32> to vector<64x64xf32>
    %106 = arith.addf %102, %105 : vector<64x64xf32>
    %c0_49 = arith.constant 0 : index
    %c1_50 = arith.constant 1 : index
    %c0_51 = arith.constant 0 : index
    %c0_52 = arith.constant 0 : index
    %107 = vector.load %arg2[%c0_49, %c1_50, %c0_51, %c0_52] : memref<8x2x8x64xf32, #tpu.memory_space<vmem>>, vector<8x1x8x64xf32>
    %108 = vector.shape_cast %107 : vector<8x1x8x64xf32> to vector<8x8x64xf32>
    %109 = vector.shape_cast %108 : vector<8x8x64xf32> to vector<64x64xf32>
    %cst_53 = arith.constant dense<0.000000e+00> : vector<64x64xf32>
    %110 = tpu.matmul %109, %2, %cst_53 {dimension_numbers = #tpu.dot_dimension_numbers<[1], [0], [0], [1], [0, 0, 1, 1], [], []>} : vector<64x64xf32>, vector<64x64xf32>, vector<64x64xf32> -> vector<64x64xf32>
    %111 = arith.addf %106, %110 : vector<64x64xf32>
    %cst_54 = arith.constant 0.000000e+00 : f32
    %112 = vector.broadcast %cst_54 : f32 to vector<64x64xf32>
    %113 = arith.select %9, %112, %111 : vector<64x64xi1>, vector<64x64xf32>
    %cst_55 = arith.constant dense<0.000000e+00> : vector<64xf32>
    %114 = vector.multi_reduction <add>, %113, %cst_55 [1] : vector<64x64xf32> to vector<64xf32>
    %115 = vector.shape_cast %114 : vector<64xf32> to vector<64x1xf32>
    %116 = arith.select %9, %111, %112 : vector<64x64xi1>, vector<64x64xf32>
    %cst_56 = arith.constant dense<0.000000e+00> : vector<64xf32>
    %117 = vector.multi_reduction <add>, %116, %cst_56 [1] : vector<64x64xf32> to vector<64xf32>
    %118 = vector.shape_cast %117 : vector<64xf32> to vector<64x1xf32>
    %119 = vector.shape_cast %118 : vector<64x1xf32> to vector<64x1xf32>
    %120 = vector.broadcast %119 : vector<64x1xf32> to vector<64x64xf32>
    %121 = vector.shape_cast %115 : vector<64x1xf32> to vector<64x1xf32>
    %122 = vector.broadcast %121 : vector<64x1xf32> to vector<64x64xf32>
    %123 = arith.select %9, %120, %122 : vector<64x64xi1>, vector<64x64xf32>
    %cst_57 = arith.constant 3.125000e-02 : f32
    %124 = vector.broadcast %cst_57 : f32 to vector<64x64xf32>
    %125 = arith.mulf %123, %124 : vector<64x64xf32>
    %126 = arith.subf %111, %125 : vector<64x64xf32>
    %127 = arith.mulf %126, %126 : vector<64x64xf32>
    %128 = arith.select %9, %112, %127 : vector<64x64xi1>, vector<64x64xf32>
    %cst_58 = arith.constant dense<0.000000e+00> : vector<64xf32>
    %129 = vector.multi_reduction <add>, %128, %cst_58 [1] : vector<64x64xf32> to vector<64xf32>
    %130 = vector.shape_cast %129 : vector<64xf32> to vector<64x1xf32>
    %131 = arith.select %9, %127, %112 : vector<64x64xi1>, vector<64x64xf32>
    %cst_59 = arith.constant dense<0.000000e+00> : vector<64xf32>
    %132 = vector.multi_reduction <add>, %131, %cst_59 [1] : vector<64x64xf32> to vector<64xf32>
    %133 = vector.shape_cast %132 : vector<64xf32> to vector<64x1xf32>
    %134 = vector.shape_cast %133 : vector<64x1xf32> to vector<64x1xf32>
    %135 = vector.broadcast %134 : vector<64x1xf32> to vector<64x64xf32>
    %136 = vector.shape_cast %130 : vector<64x1xf32> to vector<64x1xf32>
    %137 = vector.broadcast %136 : vector<64x1xf32> to vector<64x64xf32>
    %138 = arith.select %9, %135, %137 : vector<64x64xi1>, vector<64x64xf32>
    %cst_60 = arith.constant 3.125000e-02 : f32
    %139 = vector.broadcast %cst_60 : f32 to vector<64x64xf32>
    %140 = arith.mulf %138, %139 : vector<64x64xf32>
    %cst_61 = arith.constant 9.99999974E-6 : f32
    %141 = vector.broadcast %cst_61 : f32 to vector<64x64xf32>
    %142 = arith.addf %140, %141 : vector<64x64xf32>
    %143 = math.rsqrt %142 : vector<64x64xf32>
    %144 = arith.mulf %126, %143 : vector<64x64xf32>
    %145 = vector.broadcast %3 : vector<1x64xf32> to vector<64x64xf32>
    %146 = arith.mulf %144, %145 : vector<64x64xf32>
    %147 = vector.broadcast %4 : vector<1x64xf32> to vector<64x64xf32>
    %148 = arith.addf %146, %147 : vector<64x64xf32>
    %cst_62 = arith.constant 0.000000e+00 : f32
    %149 = vector.broadcast %cst_62 : f32 to vector<64x64xf32>
    %150 = arith.select %9, %149, %148 : vector<64x64xi1>, vector<64x64xf32>
    %cst_63 = arith.constant dense<0.000000e+00> : vector<64xf32>
    %151 = vector.multi_reduction <add>, %150, %cst_63 [1] : vector<64x64xf32> to vector<64xf32>
    %152 = vector.shape_cast %151 : vector<64xf32> to vector<64x1xf32>
    %153 = arith.select %9, %148, %149 : vector<64x64xi1>, vector<64x64xf32>
    %cst_64 = arith.constant dense<0.000000e+00> : vector<64xf32>
    %154 = vector.multi_reduction <add>, %153, %cst_64 [1] : vector<64x64xf32> to vector<64xf32>
    %155 = vector.shape_cast %154 : vector<64xf32> to vector<64x1xf32>
    %156 = vector.shape_cast %155 : vector<64x1xf32> to vector<64x1xf32>
    %157 = vector.broadcast %156 : vector<64x1xf32> to vector<64x64xf32>
    %158 = vector.shape_cast %152 : vector<64x1xf32> to vector<64x1xf32>
    %159 = vector.broadcast %158 : vector<64x1xf32> to vector<64x64xf32>
    %160 = arith.select %9, %157, %159 : vector<64x64xi1>, vector<64x64xf32>
    %cst_65 = arith.constant 3.125000e-02 : f32
    %161 = vector.broadcast %cst_65 : f32 to vector<64x64xf32>
    %162 = arith.mulf %160, %161 : vector<64x64xf32>
    %163 = arith.subf %148, %162 : vector<64x64xf32>
    %164 = arith.mulf %163, %163 : vector<64x64xf32>
    %165 = arith.select %9, %149, %164 : vector<64x64xi1>, vector<64x64xf32>
    %cst_66 = arith.constant dense<0.000000e+00> : vector<64xf32>
    %166 = vector.multi_reduction <add>, %165, %cst_66 [1] : vector<64x64xf32> to vector<64xf32>
    %167 = vector.shape_cast %166 : vector<64xf32> to vector<64x1xf32>
    %168 = arith.select %9, %164, %149 : vector<64x64xi1>, vector<64x64xf32>
    %cst_67 = arith.constant dense<0.000000e+00> : vector<64xf32>
    %169 = vector.multi_reduction <add>, %168, %cst_67 [1] : vector<64x64xf32> to vector<64xf32>
    %170 = vector.shape_cast %169 : vector<64xf32> to vector<64x1xf32>
    %171 = vector.shape_cast %170 : vector<64x1xf32> to vector<64x1xf32>
    %172 = vector.broadcast %171 : vector<64x1xf32> to vector<64x64xf32>
    %173 = vector.shape_cast %167 : vector<64x1xf32> to vector<64x1xf32>
    %174 = vector.broadcast %173 : vector<64x1xf32> to vector<64x64xf32>
    %175 = arith.select %9, %172, %174 : vector<64x64xi1>, vector<64x64xf32>
    %cst_68 = arith.constant 3.125000e-02 : f32
    %176 = vector.broadcast %cst_68 : f32 to vector<64x64xf32>
    %177 = arith.mulf %175, %176 : vector<64x64xf32>
    %cst_69 = arith.constant 9.99999974E-6 : f32
    %178 = vector.broadcast %cst_69 : f32 to vector<64x64xf32>
    %179 = arith.addf %177, %178 : vector<64x64xf32>
    %180 = math.rsqrt %179 : vector<64x64xf32>
    %181 = arith.mulf %163, %180 : vector<64x64xf32>
    %182 = vector.broadcast %5 : vector<1x64xf32> to vector<64x64xf32>
    %183 = arith.mulf %181, %182 : vector<64x64xf32>
    %184 = vector.broadcast %6 : vector<1x64xf32> to vector<64x64xf32>
    %185 = arith.addf %183, %184 : vector<64x64xf32>
    %186 = vector.shape_cast %185 : vector<64x64xf32> to vector<8x8x64xf32>
    %c0_70 = arith.constant 0 : index
    %c1_71 = arith.constant 1 : index
    %c0_72 = arith.constant 0 : index
    %c0_73 = arith.constant 0 : index
    %187 = vector.load %arg10[%c0_70, %c1_71, %c0_72, %c0_73] : memref<8x2x8x64xf32, #tpu.memory_space<vmem>>, vector<8x1x8x64xf32>
    %188 = vector.shape_cast %187 : vector<8x1x8x64xf32> to vector<8x8x64xf32>
    %189 = vector.shape_cast %186 : vector<8x8x64xf32> to vector<8x1x8x64xf32>
    tpu.vector_store %arg10[%c0_70, %c1_71, %c0_72, %c0_73], %189 {strides = array<i32>} : memref<8x2x8x64xf32, #tpu.memory_space<vmem>>, vector<8x1x8x64xf32>,
    return
  }
  func.func @transform_0(%arg0: i32) -> (i32, i32, i32) {
    %c0_i32 = arith.constant 0 : i32
    %c0_i32_0 = arith.constant 0 : i32
    %c0_i32_1 = arith.constant 0 : i32
    return %arg0, %c0_i32, %c0_i32_0 : i32, i32, i32
  }
  func.func @transform_1(%arg0: i32) -> (i32, i32, i32, i32) {
    %c0_i32 = arith.constant 0 : i32
    %c0_i32_0 = arith.constant 0 : i32
    %c0_i32_1 = arith.constant 0 : i32
    %c0_i32_2 = arith.constant 0 : i32
    return %arg0, %c0_i32, %c0_i32_0, %c0_i32_1 : i32, i32, i32, i32
  }
  func.func @transform_2(%arg0: i32) -> (i32, i32, i32) {
    %c0_i32 = arith.constant 0 : i32
    %c0_i32_0 = arith.constant 0 : i32
    %c0_i32_1 = arith.constant 0 : i32
    %c0_i32_2 = arith.constant 0 : i32
    return %c0_i32, %c0_i32_0, %c0_i32_1 : i32, i32, i32
  }
  func.func @transform_3(%arg0: i32) -> (i32, i32) {
    %c0_i32 = arith.constant 0 : i32
    %c0_i32_0 = arith.constant 0 : i32
    %c0_i32_1 = arith.constant 0 : i32
    return %c0_i32, %c0_i32_0 : i32, i32
  }
  func.func @transform_4(%arg0: i32) -> (i32, i32, i32) {
    %c0_i32 = arith.constant 0 : i32
    %c0_i32_0 = arith.constant 0 : i32
    %c0_i32_1 = arith.constant 0 : i32
    %c0_i32_2 = arith.constant 0 : i32
    return %c0_i32, %c0_i32_0, %c0_i32_1 : i32, i32, i32
  }
  func.func @transform_5(%arg0: i32) -> (i32, i32) {
    %c0_i32 = arith.constant 0 : i32
    %c0_i32_0 = arith.constant 0 : i32
    %c0_i32_1 = arith.constant 0 : i32
    return %c0_i32, %c0_i32_0 : i32, i32
  }
  func.func @transform_6(%arg0: i32) -> (i32, i32) {
    %c0_i32 = arith.constant 0 : i32
    %c0_i32_0 = arith.constant 0 : i32
    %c0_i32_1 = arith.constant 0 : i32
    return %c0_i32, %c0_i32_0 : i32, i32
  }
  func.func @transform_7(%arg0: i32) -> (i32, i32) {
    %c0_i32 = arith.constant 0 : i32
    %c0_i32_0 = arith.constant 0 : i32
    %c0_i32_1 = arith.constant 0 : i32
    return %c0_i32, %c0_i32_0 : i32, i32
  }
  func.func @transform_8(%arg0: i32) -> (i32, i32) {
    %c0_i32 = arith.constant 0 : i32
    %c0_i32_0 = arith.constant 0 : i32
    %c0_i32_1 = arith.constant 0 : i32
    return %c0_i32, %c0_i32_0 : i32, i32
  }
  func.func @transform_9(%arg0: i32) -> (i32, i32, i32, i32) {
    %c0_i32 = arith.constant 0 : i32
    %c0_i32_0 = arith.constant 0 : i32
    %c0_i32_1 = arith.constant 0 : i32
    %c0_i32_2 = arith.constant 0 : i32
    return %arg0, %c0_i32, %c0_i32_0, %c0_i32_1 : i32, i32, i32, i32
  }
}

</mosaic_0001>

<bundles_post_ra>
// kernel: patch_up_forward.1
= control target key start
LH: loop header
LB: loop body
LE: loop exit
PB: predicated region body
PF: predicated region fallthrough
CT: control target
= control target key end

     0   :  { %s2142_s30 = smov 0   ;;  %s3419_s0 = inlined_call_operand.vmem [shape: f32[2,64,64], index: 0, kind: input, shape index: {}]   ;;  %s3420_s1 = inlined_call_operand.vmem [shape: f32[16,2,8,64], index: 1, kind: input, shape index: {}]   ;;  %s3421_s2 = inlined_call_operand.vmem [shape: f32[2,64,64], index: 2, kind: input, shape index: {}]   ;;  %s3422_s3 = inlined_call_operand.vmem [shape: f32[64,64], index: 3, kind: input, shape index: {}]   ;;  %s3423_s4 = inlined_call_operand.vmem [shape: f32[2,1,64], index: 4, kind: input, shape index: {}]   ;;  %s3424_s5 = inlined_call_operand.vmem [shape: f32[1,64], index: 5, kind: input, shape index: {}]   ;;  %s3425_s6 = inlined_call_operand.vmem [shape: f32[1,64], index: 6, kind: input, shape index: {}]   ;;  %s3426_s7 = inlined_call_operand.vmem [shape: f32[1,64], index: 7, kind: input, shape index: {}]   ;;  %s3427_s8 = inlined_call_operand.vmem [shape: f32[1,64], index: 8, kind: input, shape index: {}]   ;;  %s3428_s9 = inlined_call_operand.vmem [shape: f32[16,2,8,64], index: 9, kind: output, shape index: {}]  }
   0x1 LB: > { %s2148_s10 = sadd.s32 4294967295, %s2090_s30   ;;  %p1935_p0 = scmp.ge.s32.totalorder %s2090_s30, 1  ;;  %s2090_s30 = sphi %s2142_s30, %s19_s30  }
   0x2   : > { %p299_p1 = scmp.lt.s32.totalorder %s2090_s30, 3 }
   0x4   : > { %p300_p2 = pnand %p1935_p0, %p299_p1 }
   0x5   : > { %p342_p3 = scmp.lt.s32.totalorder (!%p300_p2), %s2148_s10, 1  ;;  %s1938_s17 = sshll.u32 (!%p300_p2), %s2148_s10, 3 }
   0x6   : > { %303 = sbr.rel (%p300_p2) target bundleno = 817 (0x331), region = 56  ;;  %p2169_p4 = scmp.lt.s32.totalorder (!%p300_p2), %s1938_s17, 15 }
   0xb   : > { %v391_v0 = vld [vmem:[%s3421_s2 + $0x38] sm:$0xff]  ;;  %v390_v2 = vld [vmem:[%s3421_s2 + $0x30] sm:$0xff]  ;;  %v389_v5 = vld [vmem:[%s3421_s2 + $0x28] sm:$0xff]  ;;  %s3441_s10 = smov (!%p342_p3, %s2148_s10), 1  ;;  %s3443_s17 = smov (!%p2169_p4, %s1938_s17), 15  ;;  %vm396_vm0 = vcmask 523264   ;;  %v381_v48 = vlaneseq }
   0xc   : > { %v1967_v1 = vld [vmem:[%s3421_s2 + $0x78] sm:$0xff]  ;;  %429 = vmatpush.msra.mxu0 %v391_v0  ;;  %v1966_v4 = vld [vmem:[%s3421_s2 + $0x70] sm:$0xff]  ;;  %v1965_v7 = vld [vmem:[%s3421_s2 + $0x68] sm:$0xff]  ;;  %s2003_s24 = sshll.u32 %s3441_s10, 6  ;;  %s2004_s15 = sshll.u32 %s3443_s17, 4 }
   0xd   : > { %1161 = vmatpush.msra.mxu2 %v1967_v1  ;;  %v376_v3 = vld [vmem:[%s3422_s3 + $0x38] sm:$0xff]  ;;  %v375_v6 = vld [vmem:[%s3422_s3 + $0x30] sm:$0xff]  ;;  %v374_v8 = vld [vmem:[%s3422_s3 + $0x28] sm:$0xff]  ;;  %s2220_s14 = scalar_lea.vmem %s3419_s0, %s2003_s24  ;;  %s2244_s29 = scalar_lea.vmem %s3420_s1, %s2004_s15  ;;  %v2309_v50 = vand.u32 127, %v381_v48 }
   0xe   : > { %502 = vmatpush.msra.mxu1 %v376_v3  ;;  %1235 = vmatpush.msra.mxu3 %v376_v3  ;;  %v388_v9 = vld [vmem:[%s3421_s2 + $0x20] sm:$0xff]  ;;  %v387_v12 = vld [vmem:[%s3421_s2 + $0x18] sm:$0xff]  ;;  %v386_v15 = vld [vmem:[%s3421_s2 + $0x10] sm:$0xff]  ;;  %s3305_s28 = scalar_lea.vmem %s3428_s9, %s2004_s15 }
   0xf   : > { %430 = vmatpush.msra.mxu0 %v390_v2  ;;  %1162 = vmatpush.msra.mxu2 %v1966_v4  ;;  %v1964_v10 = vld [vmem:[%s3421_s2 + $0x60] sm:$0xff]  ;;  %v1963_v13 = vld [vmem:[%s3421_s2 + $0x58] sm:$0xff]  ;;  %v1962_v16 = vld [vmem:[%s3421_s2 + $0x50] sm:$0xff]  ;;  %vm383_vm1 = vcmp.ge.s32.totalorder %v2309_v50, 32 }
  0x10   : > { %503 = vmatpush.msra.mxu1 %v375_v6  ;;  %1236 = vmatpush.msra.mxu3 %v375_v6  ;;  %v373_v11 = vld [vmem:[%s3422_s3 + $0x20] sm:$0xff]  ;;  %v372_v14 = vld [vmem:[%s3422_s3 + $0x18] sm:$0xff]  ;;  %v371_v17 = vld [vmem:[%s3422_s3 + $0x10] sm:$0xff] }
  0x11   : > { %431 = vmatpush.msra.mxu0 %v389_v5  ;;  %1163 = vmatpush.msra.mxu2 %v1965_v7  ;;  %v385_v18 = vld [vmem:[%s3421_s2 + $0x8] sm:$0xff]  ;;  %v384_v20 = vld [vmem:[%s3421_s2] sm:$0xff]  ;;  %v1978_v28 = vld [vmem:[%s2244_s29 + $0x18] sm:$0xff] }
  0x12   : > { %504 = vmatpush.msra.mxu1 %v374_v8  ;;  %1237 = vmatpush.msra.mxu3 %v374_v8  ;;  %v1961_v19 = vld [vmem:[%s3421_s2 + $0x48] sm:$0xff]  ;;  %v1960_v22 = vld [vmem:[%s3421_s2 + $0x40] sm:$0xff]  ;;  %v463_v29 = vld [vmem:[%s2244_s29 + $0x10] sm:$0xff] }
  0x13   : > { %432 = vmatpush.msra.mxu0 %v388_v9  ;;  %1164 = vmatpush.msra.mxu2 %v1964_v10  ;;  %v370_v21 = vld [vmem:[%s3422_s3 + $0x8] sm:$0xff]  ;;  %v361_v23 = vld [vmem:[%s2220_s14] sm:$0xff]  ;;  %v363_v30 = vld [vmem:[%s2220_s14 + $0x10] sm:$0xff] }
  0x14   : > { %505 = vmatpush.msra.mxu1 %v373_v11  ;;  %1238 = vmatpush.msra.mxu3 %v373_v11  ;;  %v369_v24 = vld [vmem:[%s3422_s3] sm:$0xff]  ;;  %v1977_v26 = vld [vmem:[%s2244_s29 + $0x8] sm:$0xff]  ;;  %v364_v33 = vld [vmem:[%s2220_s14 + $0x18] sm:$0xff] }
  0x15   : > { %433 = vmatpush.msra.mxu0 %v387_v12  ;;  %1165 = vmatpush.msra.mxu2 %v1963_v13  ;;  %v462_v25 = vld [vmem:[%s2244_s29] sm:$0xff]  ;;  %v362_v27 = vld [vmem:[%s2220_s14 + $0x8] sm:$0xff]  ;;  %v465_v34 = vld [vmem:[%s2244_s29 + $0x30] sm:$0xff] }
  0x16   : > { %506 = vmatpush.msra.mxu1 %v372_v14  ;;  %1239 = vmatpush.msra.mxu3 %v372_v14  ;;  %v1979_v31 = vld [vmem:[%s2244_s29 + $0x28] sm:$0xff]  ;;  %v464_v32 = vld [vmem:[%s2244_s29 + $0x20] sm:$0xff]  ;;  %v1980_v35 = vld [vmem:[%s2244_s29 + $0x38] sm:$0xff] }
  0x17   : > { %434 = vmatpush.msra.mxu0 %v386_v15  ;;  %1166 = vmatpush.msra.mxu2 %v1962_v16  ;;  %v365_v36 = vld [vmem:[%s2220_s14 + $0x20] sm:$0xff]  ;;  %v1981_v38 = vld [vmem:[%s2244_s29 + $0x48] sm:$0xff]  ;;  %v1982_v40 = vld [vmem:[%s2244_s29 + $0x58] sm:$0xff] }
  0x18   : > { %507 = vmatpush.msra.mxu1 %v371_v17  ;;  %1240 = vmatpush.msra.mxu3 %v371_v17  ;;  %v466_v37 = vld [vmem:[%s2244_s29 + $0x40] sm:$0xff]  ;;  %v366_v39 = vld [vmem:[%s2220_s14 + $0x28] sm:$0xff]  ;;  %v467_v41 = vld [vmem:[%s2244_s29 + $0x50] sm:$0xff] }
  0x19   : > { %435 = vmatpush.msra.mxu0 %v385_v18  ;;  %1167 = vmatpush.msra.mxu2 %v1961_v19  ;;  %v367_v42 = vld [vmem:[%s2220_s14 + $0x30] sm:$0xff]  ;;  %v468_v43 = vld [vmem:[%s2244_s29 + $0x60] sm:$0xff]  ;;  %v1983_v44 = vld [vmem:[%s2244_s29 + $0x68] sm:$0xff] }
  0x1a   : > { %508 = vmatpush.msra.mxu1 %v370_v21  ;;  %1241 = vmatpush.msra.mxu3 %v370_v21  ;;  %v368_v45 = vld [vmem:[%s2220_s14 + $0x38] sm:$0xff]  ;;  %v469_v46 = vld [vmem:[%s2244_s29 + $0x70] sm:$0xff]  ;;  %v2307_v49 = vld [vmem:[%s3423_s4] ss:$0 sm:$0xff] }
  0x1b   : > { %436 = vmatpush.msra.mxu0 %v384_v20  ;;  %1168 = vmatpush.msra.mxu2 %v1960_v22  ;;  %v1984_v47 = vld [vmem:[%s2244_s29 + $0x78] sm:$0xff]  ;;  %v2318_v55 = vld [vmem:[%s3423_s4 + $0x1] ss:$0 sm:$0xff] }
  0x1c   : > { %1944 = vmatmul.msk.f32.vlgmr.msra.gmra.mxu0 %vm396_vm0, %v361_v23  ;;  %1969 = vmatmul.msk.f32.vlgmr.msra.gmra.mxu2 %vm396_vm0, %v361_v23 }
  0x1d   : > { %509 = vmatpush.msra.mxu1 %v369_v24  ;;  %1242 = vmatpush.msra.mxu3 %v369_v24 }
  0x1e   : > { %1952 = vmatmul.msk.f32.vlgmr.msra.gmra.mxu1 %vm396_vm0, %v462_v25  ;;  %1985 = vmatmul.msk.f32.vlgmr.msra.gmra.mxu3 %vm396_vm0, %v1977_v26 }
  0x24   : > { %1970 = vmatmul.msk.f32.gmra.mxu2 %vm396_vm0, %v362_v27  ;;  %1945 = vmatmul.msk.f32.gmra.mxu0 %vm396_vm0, %v362_v27 }
  0x26   : > { %1986 = vmatmul.msk.f32.gmra.mxu3 %vm396_vm0, %v1978_v28  ;;  %1953 = vmatmul.msk.f32.gmra.mxu1 %vm396_vm0, %v463_v29 }
  0x2c   : > { %1971 = vmatmul.msk.f32.gmra.mxu2 %vm396_vm0, %v363_v30  ;;  %1946 = vmatmul.msk.f32.gmra.mxu0 %vm396_vm0, %v363_v30 }
  0x2e   : > { %1987 = vmatmul.msk.f32.gmra.mxu3 %vm396_vm0, %v1979_v31  ;;  %1954 = vmatmul.msk.f32.gmra.mxu1 %vm396_vm0, %v464_v32 }
  0x34   : > { %1947 = vmatmul.msk.f32.gmra.mxu0 %vm396_vm0, %v364_v33  ;;  %1972 = vmatmul.msk.f32.gmra.mxu2 %vm396_vm0, %v364_v33 }
  0x36   : > { %1955 = vmatmul.msk.f32.gmra.mxu1 %vm396_vm0, %v465_v34  ;;  %1988 = vmatmul.msk.f32.gmra.mxu3 %vm396_vm0, %v1980_v35 }
  0x3c   : > { %1948 = vmatmul.msk.f32.gmra.mxu0 %vm396_vm0, %v365_v36  ;;  %1973 = vmatmul.msk.f32.gmra.mxu2 %vm396_vm0, %v365_v36 }
  0x3e   : > { %1956 = vmatmul.msk.f32.gmra.mxu1 %vm396_vm0, %v466_v37  ;;  %1989 = vmatmul.msk.f32.gmra.mxu3 %vm396_vm0, %v1981_v38 }
  0x44   : > { %1974 = vmatmul.msk.f32.gmra.mxu2 %vm396_vm0, %v366_v39  ;;  %1949 = vmatmul.msk.f32.gmra.mxu0 %vm396_vm0, %v366_v39 }
  0x46   : > { %1990 = vmatmul.msk.f32.gmra.mxu3 %vm396_vm0, %v1982_v40  ;;  %1957 = vmatmul.msk.f32.gmra.mxu1 %vm396_vm0, %v467_v41 }
  0x4c   : > { %1950 = vmatmul.msk.f32.gmra.mxu0 %vm396_vm0, %v367_v42  ;;  %1975 = vmatmul.msk.f32.gmra.mxu2 %vm396_vm0, %v367_v42 }
  0x4e   : > { %1958 = vmatmul.msk.f32.gmra.mxu1 %vm396_vm0, %v468_v43  ;;  %1991 = vmatmul.msk.f32.gmra.mxu3 %vm396_vm0, %v1983_v44 }
  0x54   : > { %1951 = vmatmul.msk.f32.gmra.mxu0 %vm396_vm0, %v368_v45  ;;  %1976 = vmatmul.msk.f32.gmra.mxu2 %vm396_vm0, %v368_v45 }
  0x56   : > { %1959 = vmatmul.msk.f32.gmra.mxu1 %vm396_vm0, %v469_v46  ;;  %1992 = vmatmul.msk.f32.gmra.mxu3 %vm396_vm0, %v1984_v47 }
  0x99   : > { %v438_v51 = vpop.f32.mrf.mxu0 }
  0x9a   : > { %v439_v52 = vadd.f32 %v2307_v49, %v438_v51 }
  0x9b   : > { %v511_v53 = vpop.f32.mrf.mxu1 }
  0x9c   : > { %v2313_v54 = vadd.f32 %v511_v53, %v439_v52 }
  0x9e   : > { %v575_v56 = vsel %vm383_vm1, %v2313_v54, 0.0  ;;  %v543_v57 = vsel %vm383_vm1, 0.0, %v2313_v54 }
  0x9f   : > { %v1170_v58 = vpop.f32.mrf.mxu2  ;;  %v583_v59 = vsel %vm396_vm0, %v575_v56, 0.0  ;;  %v551_v60 = vsel %vm396_vm0, %v543_v57, 0.0 }
  0xa0   : > { %v1171_v61 = vadd.f32 %v2318_v55, %v1170_v58  ;;  %584 = vadd.xlane.f32.xlu2 %v583_v59  ;;  %552 = vadd.xlane.f32.xlu0 %v551_v60 }
  0xa1   : > { %v1244_v62 = vpop.f32.mrf.mxu3  ;;  %v441_v63 = vpop.f32.mrf.mxu0 }
  0xa2   : > { %v2329_v0 = vadd.f32 %v1244_v62, %v1171_v61  ;;  %v442_v1 = vadd.f32 %v2307_v49, %v441_v63 }
  0xa3   : > { %v514_v2 = vpop.f32.mrf.mxu1 }
  0xa4   : > { %v1276_v3 = vsel %vm383_vm1, 0.0, %v2329_v0  ;;  %v1308_v4 = vsel %vm383_vm1, %v2329_v0, 0.0  ;;  %v2340_v7 = vadd.f32 %v514_v2, %v442_v1 }
  0xa5   : > { %v1284_v5 = vsel %vm396_vm0, %v1276_v3, 0.0  ;;  %v1316_v6 = vsel %vm396_vm0, %v1308_v4, 0.0 }
  0xa6   : > { %1285 = vadd.xlane.f32.xlu1 %v1284_v5  ;;  %v544_v14 = vsel %vm383_vm1, 0.0, %v2340_v7  ;;  %v576_v32 = vsel %vm383_vm1, %v2340_v7, 0.0 }
  0xa7   : > { %v1173_v8 = vpop.f32.mrf.mxu2  ;;  %v554_v21 = vsel %vm396_vm0, %v544_v14, 0.0  ;;  %v586_v35 = vsel %vm396_vm0, %v576_v32, 0.0 }
  0xa8   : > { %v1174_v9 = vadd.f32 %v2318_v55, %v1173_v8  ;;  %1317 = vadd.xlane.f32.xlu0 %v1316_v6 }
  0xa9   : > { %v1247_v10 = vpop.f32.mrf.mxu3  ;;  %v444_v11 = vpop.f32.mrf.mxu0 }
  0xaa   : > { %v2343_v12 = vadd.f32 %v1247_v10, %v1174_v9  ;;  %v445_v13 = vadd.f32 %v2307_v49, %v444_v11 }
  0xab   : > { %v517_v15 = vpop.f32.mrf.mxu1 }
  0xac   : > { %v1309_v16 = vsel %vm383_vm1, %v2343_v12, 0.0  ;;  %v1277_v17 = vsel %vm383_vm1, 0.0, %v2343_v12  ;;  %v2355_v18 = vadd.f32 %v517_v15, %v445_v13 }
  0xad   : > { %v1319_v19 = vsel %vm396_vm0, %v1309_v16, 0.0  ;;  %v1287_v20 = vsel %vm396_vm0, %v1277_v17, 0.0 }
  0xae   : > { %1320 = vadd.xlane.f32.xlu1 %v1319_v19  ;;  %1288 = vadd.xlane.f32.xlu2 %v1287_v20  ;;  %v545_v24 = vsel %vm383_vm1, 0.0, %v2355_v18  ;;  %v577_v40 = vsel %vm383_vm1, %v2355_v18, 0.0 }
  0xaf   : > { %v1176_v22 = vpop.f32.mrf.mxu2  ;;  %v557_v29 = vsel %vm396_vm0, %v545_v24, 0.0  ;;  %v589_v47 = vsel %vm396_vm0, %v577_v40, 0.0 }
  0xb0   : > { %v1177_v23 = vadd.f32 %v2318_v55, %v1176_v22  ;;  %555 = vadd.xlane.f32.xlu0 %v554_v21 }
  0xb1   : > { %v1250_v25 = vpop.f32.mrf.mxu3  ;;  %v447_v26 = vpop.f32.mrf.mxu0 }
  0xb2   : > { %v2364_v27 = vadd.f32 %v1250_v25, %v1177_v23  ;;  %v448_v28 = vadd.f32 %v2307_v49, %v447_v26 }
  0xb3   : > { %v520_v30 = vpop.f32.mrf.mxu1 }
  0xb4   : > { %v1310_v31 = vsel %vm383_vm1, %v2364_v27, 0.0  ;;  %v2374_v33 = vadd.f32 %v520_v30, %v448_v28  ;;  %v1278_v43 = vsel %vm383_vm1, 0.0, %v2364_v27 }
  0xb5   : > { %v1322_v34 = vsel %vm396_vm0, %v1310_v31, 0.0  ;;  %v1290_v48 = vsel %vm396_vm0, %v1278_v43, 0.0 }
  0xb6   : > { %558 = vadd.xlane.f32.xlu1 %v557_v29  ;;  %1323 = vadd.xlane.f32.xlu2 %v1322_v34  ;;  %v578_v37 = vsel %vm383_vm1, %v2374_v33, 0.0  ;;  %v546_v53 = vsel %vm383_vm1, 0.0, %v2374_v33 }
  0xb7   : > { %v1179_v36 = vpop.f32.mrf.mxu2  ;;  %v592_v44 = vsel %vm396_vm0, %v578_v37, 0.0  ;;  %v560_v60 = vsel %vm396_vm0, %v546_v53, 0.0 }
  0xb8   : > { %587 = vadd.xlane.f32.xlu0 %v586_v35  ;;  %v1180_v42 = vadd.f32 %v2318_v55, %v1179_v36 }
  0xb9   : > { %v450_v38 = vpop.f32.mrf.mxu0  ;;  %v1253_v39 = vpop.f32.mrf.mxu3 }
  0xba   : > { %v451_v41 = vadd.f32 %v2307_v49, %v450_v38  ;;  %v2394_v51 = vadd.f32 %v1253_v39, %v1180_v42 }
  0xbb   : > { %v523_v45 = vpop.f32.mrf.mxu1 }
  0xbc   : > { %v2390_v46 = vadd.f32 %v523_v45, %v451_v41  ;;  %v1311_v59 = vsel %vm383_vm1, %v2394_v51, 0.0  ;;  %v1279_v3 = vsel %vm383_vm1, 0.0, %v2394_v51 }
  0xbd   : > { %v1325_v63 = vsel %vm396_vm0, %v1311_v59, 0.0  ;;  %v1293_v10 = vsel %vm396_vm0, %v1279_v3, 0.0 }
  0xbe   : > { %590 = vadd.xlane.f32.xlu1 %v589_v47  ;;  %593 = vadd.xlane.f32.xlu2 %v592_v44  ;;  %v547_v56 = vsel %vm383_vm1, 0.0, %v2390_v46  ;;  %v579_v8 = vsel %vm383_vm1, %v2390_v46, 0.0 }
  0xbf   : > { %v1182_v52 = vpop.f32.mrf.mxu2  ;;  %v563_v61 = vsel %vm396_vm0, %v547_v56, 0.0  ;;  %v595_v15 = vsel %vm396_vm0, %v579_v8, 0.0 }
  0xc0   : > { %1291 = vadd.xlane.f32.xlu0 %v1290_v48  ;;  %v1183_v57 = vadd.f32 %v2318_v55, %v1182_v52 }
  0xc1   : > { %v1256_v58 = vpop.f32.mrf.mxu3  ;;  %v453_v1 = vpop.f32.mrf.mxu0 }
  0xc2   : > { %v2408_v62 = vadd.f32 %v1256_v58, %v1183_v57  ;;  %v454_v5 = vadd.f32 %v2307_v49, %v453_v1 }
  0xc3   : > { %v526_v6 = vpop.f32.mrf.mxu1 }
  0xc4   : > { %v1280_v4 = vsel %vm383_vm1, 0.0, %v2408_v62  ;;  %v2424_v14 = vadd.f32 %v526_v6, %v454_v5  ;;  %v1312_v19 = vsel %vm383_vm1, %v2408_v62, 0.0 }
  0xc5   : > { %v1296_v11 = vsel %vm396_vm0, %v1280_v4, 0.0  ;;  %v1328_v23 = vsel %vm396_vm0, %v1312_v19, 0.0 }
  0xc6   : > { %561 = vadd.xlane.f32.xlu1 %v560_v60  ;;  %564 = vadd.xlane.f32.xlu2 %v563_v61  ;;  %v548_v20 = vsel %vm383_vm1, 0.0, %v2424_v14  ;;  %v580_v30 = vsel %vm383_vm1, %v2424_v14, 0.0 }
  0xc7   : > { %v1185_v2 = vpop.f32.mrf.mxu2  ;;  %v566_v24 = vsel %vm396_vm0, %v548_v20, 0.0  ;;  %v598_v36 = vsel %vm396_vm0, %v580_v30, 0.0 }
  0xc8   : > { %1326 = vadd.xlane.f32.xlu0 %v1325_v63  ;;  %v1186_v9 = vadd.f32 %v2318_v55, %v1185_v2 }
  0xc9   : > { %v1259_v13 = vpop.f32.mrf.mxu3  ;;  %v456_v17 = vpop.f32.mrf.mxu0 }
  0xca   : > { %v2427_v16 = vadd.f32 %v1259_v13, %v1186_v9  ;;  %v457_v22 = vadd.f32 %v2307_v49, %v456_v17 }
  0xcb   : > { %v529_v25 = vpop.f32.mrf.mxu1 }
  0xcc   : > { %v1281_v21 = vsel %vm383_vm1, 0.0, %v2427_v16  ;;  %v2442_v29 = vadd.f32 %v529_v25, %v457_v22  ;;  %v1313_v31 = vsel %vm383_vm1, %v2427_v16, 0.0 }
  0xcd   : > { %v1299_v26 = vsel %vm396_vm0, %v1281_v21, 0.0  ;;  %v1331_v37 = vsel %vm396_vm0, %v1313_v31, 0.0 }
  0xce   : > { %1294 = vadd.xlane.f32.xlu1 %v1293_v10  ;;  %1297 = vadd.xlane.f32.xlu2 %v1296_v11  ;;  %v549_v35 = vsel %vm383_vm1, 0.0, %v2442_v29  ;;  %v581_v43 = vsel %vm383_vm1, %v2442_v29, 0.0 }
  0xcf   : > { %v1188_v28 = vpop.f32.mrf.mxu2  ;;  %v569_v39 = vsel %vm396_vm0, %v549_v35, 0.0  ;;  %v601_v56 = vsel %vm396_vm0, %v581_v43, 0.0 }
  0xd0   : > { %596 = vadd.xlane.f32.xlu0 %v595_v15  ;;  %v1189_v32 = vadd.f32 %v2318_v55, %v1188_v28 }
  0xd1   : > { %v1262_v34 = vpop.f32.mrf.mxu3  ;;  %v459_v40 = vpop.f32.mrf.mxu0 }
  0xd2   : > { %v2456_v38 = vadd.f32 %v1262_v34, %v1189_v32  ;;  %v460_v44 = vadd.f32 %v2307_v49, %v459_v40 }
  0xd3   : > { %v532_v47 = vpop.f32.mrf.mxu1 }
  0xd4   : > { %v1282_v42 = vsel %vm383_vm1, 0.0, %v2456_v38  ;;  %v1314_v52 = vsel %vm383_vm1, %v2456_v38, 0.0  ;;  %v2472_v57 = vadd.f32 %v532_v47, %v460_v44 }
  0xd5   : > { %v1302_v53 = vsel %vm396_vm0, %v1282_v42, 0.0  ;;  %v1334_v59 = vsel %vm396_vm0, %v1314_v52, 0.0 }
  0xd6   : > { %1329 = vadd.xlane.f32.xlu1 %v1328_v23  ;;  %567 = vadd.xlane.f32.xlu2 %v566_v24  ;;  %v550_v49 = vsel %vm383_vm1, 0.0, %v2472_v57  ;;  %v582_v60 = vsel %vm383_vm1, %v2472_v57, 0.0 }
  0xd7   : > { %v1191_v41 = vpop.f32.mrf.mxu2  ;;  %v572_v61 = vsel %vm396_vm0, %v550_v49, 0.0  ;;  %v604_v1 = vsel %vm396_vm0, %v582_v60, 0.0 }
  0xd8   : > { %1300 = vadd.xlane.f32.xlu0 %v1299_v26  ;;  %v1192_v45 = vadd.f32 %v2318_v55, %v1191_v41 }
  0xd9   : > { %v1265_v48 = vpop.f32.mrf.mxu3 }
  0xda   : > { %v2474_v58 = vadd.f32 %v1265_v48, %v1192_v45 }
  0xdc   : > { %v1283_v55 = vsel %vm383_vm1, 0.0, %v2474_v58  ;;  %v1315_v2 = vsel %vm383_vm1, %v2474_v58, 0.0 }
  0xdd   : > { %v1305_v63 = vsel %vm396_vm0, %v1283_v55, 0.0  ;;  %v1337_v3 = vsel %vm396_vm0, %v1315_v2, 0.0 }
  0xde   : > { %599 = vadd.xlane.f32.xlu1 %v598_v36  ;;  %1332 = vadd.xlane.f32.xlu2 %v1331_v37 }
  0xe0   : > { %570 = vadd.xlane.f32.xlu0 %v569_v39 }
  0xe6   : > { %1303 = vadd.xlane.f32.xlu1 %v1302_v53  ;;  %602 = vadd.xlane.f32.xlu2 %v601_v56 }
  0xe8   : > { %1335 = vadd.xlane.f32.xlu0 %v1334_v59 }
  0xee   : > { %573 = vadd.xlane.f32.xlu1 %v572_v61  ;;  %1306 = vadd.xlane.f32.xlu2 %v1305_v63 }
  0xf0   : > { %605 = vadd.xlane.f32.xlu0 %v604_v1 }
  0xf6   : > { %1338 = vadd.xlane.f32.xlu1 %v1337_v3 }
 0x113   : > { %v585_v4 = vpop.xlane.xlu2 %584  ;;  %v553_v5 = vpop.xlane.xlu0 %552 }
 0x114   : > { %v607_v6 = vsel %vm383_vm1, %v585_v4, %v553_v5 }
 0x115   : > { %v615_v8 = vmul.f32 0.03125, %v607_v6 }
 0x117   : > { %v2496_v9 = vsub.f32 %v2313_v54, %v615_v8 }
 0x119   : > { %v1286_v10 = vpop.xlane.xlu1 %1285  ;;  %v631_v11 = vmul.f32 %v2496_v9, %v2496_v9 }
 0x11b   : > { %v1318_v13 = vpop.xlane.xlu0 %1317  ;;  %v671_v15 = vsel %vm383_vm1, %v631_v11, 0.0  ;;  %v639_v17 = vsel %vm383_vm1, 0.0, %v631_v11 }
 0x11c   : > { %v1340_v19 = vsel %vm383_vm1, %v1318_v13, %v1286_v10  ;;  %v679_v20 = vsel %vm396_vm0, %v671_v15, 0.0  ;;  %v647_v21 = vsel %vm396_vm0, %v639_v17, 0.0 }
 0x11d   : > { %v1348_v54 = vmul.f32 0.03125, %v1340_v19  ;;  %680 = vadd.xlane.f32.xlu0 %v679_v20  ;;  %648 = vadd.xlane.f32.xlu1 %v647_v21 }
 0x11f   : > { %v2509_v22 = vsub.f32 %v2329_v0, %v1348_v54 }
 0x121   : > { %v1321_v23 = vpop.xlane.xlu1 %1320  ;;  %v1289_v24 = vpop.xlane.xlu2 %1288  ;;  %v1364_v25 = vmul.f32 %v2509_v22, %v2509_v22 }
 0x122   : > { %v1341_v26 = vsel %vm383_vm1, %v1321_v23, %v1289_v24 }
 0x123   : > { %v1349_v28 = vmul.f32 0.03125, %v1341_v26  ;;  %v556_v30 = vpop.xlane.xlu0 %555  ;;  %v1404_v31 = vsel %vm383_vm1, %v1364_v25, 0.0  ;;  %v1372_v32 = vsel %vm383_vm1, 0.0, %v1364_v25 }
 0x124   : > { %v1412_v34 = vsel %vm396_vm0, %v1404_v31, 0.0  ;;  %v1380_v0 = vsel %vm396_vm0, %v1372_v32, 0.0 }
 0x125   : > { %v2522_v35 = vsub.f32 %v2343_v12, %v1349_v28  ;;  %1413 = vadd.xlane.f32.xlu1 %v1412_v34  ;;  %1381 = vadd.xlane.f32.xlu2 %v1380_v0 }
 0x127   : > { %v1365_v36 = vmul.f32 %v2522_v35, %v2522_v35 }
 0x129   : > { %v559_v37 = vpop.xlane.xlu1 %558  ;;  %v1324_v39 = vpop.xlane.xlu2 %1323  ;;  %v1373_v40 = vsel %vm383_vm1, 0.0, %v1365_v36  ;;  %v1405_v6 = vsel %vm383_vm1, %v1365_v36, 0.0 }
 0x12a   : > { %v1383_v41 = vsel %vm396_vm0, %v1373_v40, 0.0  ;;  %v1415_v15 = vsel %vm396_vm0, %v1405_v6, 0.0 }
 0x12b   : > { %1384 = vadd.xlane.f32.xlu0 %v1383_v41  ;;  %v588_v42 = vpop.xlane.xlu0 %587 }
 0x12c   : > { %v608_v43 = vsel %vm383_vm1, %v588_v42, %v556_v30 }
 0x12d   : > { %v616_v44 = vmul.f32 0.03125, %v608_v43 }
 0x12f   : > { %v2532_v12 = vsub.f32 %v2340_v7, %v616_v44 }
 0x131   : > { %v591_v45 = vpop.xlane.xlu1 %590  ;;  %v594_v47 = vpop.xlane.xlu2 %593  ;;  %v632_v48 = vmul.f32 %v2532_v12, %v2532_v12 }
 0x132   : > { %v609_v52 = vsel %vm383_vm1, %v591_v45, %v559_v37 }
 0x133   : > { %v617_v53 = vmul.f32 0.03125, %v609_v52  ;;  %v1292_v56 = vpop.xlane.xlu0 %1291  ;;  %v672_v59 = vsel %vm383_vm1, %v632_v48, 0.0  ;;  %v640_v49 = vsel %vm383_vm1, 0.0, %v632_v48 }
 0x134   : > { %v1342_v7 = vsel %vm383_vm1, %v1324_v39, %v1292_v56  ;;  %v682_v55 = vsel %vm396_vm0, %v672_v59, 0.0  ;;  %v650_v60 = vsel %vm396_vm0, %v640_v49, 0.0 }
 0x135   : > { %v2547_v61 = vsub.f32 %v2355_v18, %v617_v53  ;;  %v1350_v63 = vmul.f32 0.03125, %v1342_v7  ;;  %683 = vadd.xlane.f32.xlu1 %v682_v55  ;;  %651 = vadd.xlane.f32.xlu2 %v650_v60 }
 0x137   : > { %v2550_v1 = vsub.f32 %v2364_v27, %v1350_v63  ;;  %v633_v2 = vmul.f32 %v2547_v61, %v2547_v61 }
 0x139   : > { %v562_v3 = vpop.xlane.xlu1 %561  ;;  %v565_v4 = vpop.xlane.xlu2 %564  ;;  %v641_v5 = vsel %vm383_vm1, 0.0, %v633_v2  ;;  %v1366_v18 = vmul.f32 %v2550_v1, %v2550_v1  ;;  %v673_v24 = vsel %vm383_vm1, %v633_v2, 0.0 }
 0x13a   : > { %v610_v8 = vsel %vm383_vm1, %v594_v47, %v562_v3  ;;  %v653_v27 = vsel %vm396_vm0, %v641_v5, 0.0  ;;  %v685_v32 = vsel %vm396_vm0, %v673_v24, 0.0 }
 0x13b   : > { %v618_v10 = vmul.f32 0.03125, %v610_v8  ;;  %654 = vadd.xlane.f32.xlu0 %v653_v27  ;;  %v1327_v11 = vpop.xlane.xlu0 %1326  ;;  %v1374_v13 = vsel %vm383_vm1, 0.0, %v1366_v18  ;;  %v1406_v20 = vsel %vm383_vm1, %v1366_v18, 0.0 }
 0x13c   : > { %v1386_v17 = vsel %vm396_vm0, %v1374_v13, 0.0  ;;  %v1418_v26 = vsel %vm396_vm0, %v1406_v20, 0.0 }
 0x13d   : > { %v2568_v19 = vsub.f32 %v2374_v33, %v618_v10  ;;  %1416 = vadd.xlane.f32.xlu2 %v1415_v15  ;;  %1387 = vadd.xlane.f32.xlu1 %v1386_v17 }
 0x13f   : > { %v634_v21 = vmul.f32 %v2568_v19, %v2568_v19 }
 0x141   : > { %v1295_v54 = vpop.xlane.xlu1 %1294  ;;  %v1298_v23 = vpop.xlane.xlu2 %1297  ;;  %v642_v25 = vsel %vm383_vm1, 0.0, %v634_v21  ;;  %v674_v37 = vsel %vm383_vm1, %v634_v21, 0.0 }
 0x142   : > { %v1343_v33 = vsel %vm383_vm1, %v1327_v11, %v1295_v54  ;;  %v656_v34 = vsel %vm396_vm0, %v642_v25, 0.0  ;;  %v688_v45 = vsel %vm396_vm0, %v674_v37, 0.0 }
 0x143   : > { %v1351_v28 = vmul.f32 0.03125, %v1343_v33  ;;  %1419 = vadd.xlane.f32.xlu0 %v1418_v26  ;;  %v597_v30 = vpop.xlane.xlu0 %596 }
 0x144   : > { %v611_v31 = vsel %vm383_vm1, %v597_v30, %v565_v4 }
 0x145   : > { %v2586_v0 = vsub.f32 %v2394_v51, %v1351_v28  ;;  %v619_v36 = vmul.f32 0.03125, %v611_v31  ;;  %686 = vadd.xlane.f32.xlu2 %v685_v32  ;;  %657 = vadd.xlane.f32.xlu1 %v656_v34 }
 0x147   : > { %v1367_v39 = vmul.f32 %v2586_v0, %v2586_v0  ;;  %v2593_v40 = vsub.f32 %v2390_v46, %v619_v36 }
 0x149   : > { %v1330_v41 = vpop.xlane.xlu1 %1329  ;;  %v568_v42 = vpop.xlane.xlu2 %567  ;;  %v1407_v43 = vsel %vm383_vm1, %v1367_v39, 0.0  ;;  %v1375_v51 = vsel %vm383_vm1, 0.0, %v1367_v39  ;;  %v635_v56 = vmul.f32 %v2593_v40, %v2593_v40 }
 0x14a   : > { %v1344_v44 = vsel %vm383_vm1, %v1330_v41, %v1298_v23  ;;  %v1421_v52 = vsel %vm396_vm0, %v1407_v43, 0.0  ;;  %v1389_v46 = vsel %vm396_vm0, %v1375_v51, 0.0 }
 0x14b   : > { %v1352_v47 = vmul.f32 0.03125, %v1344_v44  ;;  %689 = vadd.xlane.f32.xlu0 %v688_v45  ;;  %v1301_v48 = vpop.xlane.xlu0 %1300  ;;  %v675_v60 = vsel %vm383_vm1, %v635_v56, 0.0 }
 0x14c   : > { %v691_v18 = vsel %vm396_vm0, %v675_v60, 0.0 }
 0x14d   : > { %v2605_v53 = vsub.f32 %v2408_v62, %v1352_v47  ;;  %1422 = vadd.xlane.f32.xlu1 %v1421_v52  ;;  %1390 = vadd.xlane.f32.xlu2 %v1389_v46  ;;  %v643_v62 = vsel %vm383_vm1, 0.0, %v635_v56 }
 0x14e   : > { %v659_v8 = vsel %vm396_vm0, %v643_v62, 0.0 }
 0x14f   : > { %v1368_v59 = vmul.f32 %v2605_v53, %v2605_v53 }
 0x151   : > { %v600_v49 = vpop.xlane.xlu1 %599  ;;  %v1333_v7 = vpop.xlane.xlu2 %1332  ;;  %v1376_v55 = vsel %vm383_vm1, 0.0, %v1368_v59 }
 0x152   : > { %v612_v63 = vsel %vm383_vm1, %v600_v49, %v568_v42  ;;  %v1345_v2 = vsel %vm383_vm1, %v1333_v7, %v1301_v48  ;;  %v1392_v3 = vsel %vm396_vm0, %v1376_v55, 0.0 }
 0x153   : > { %v620_v4 = vmul.f32 0.03125, %v612_v63  ;;  %v1353_v5 = vmul.f32 0.03125, %v1345_v2  ;;  %1393 = vadd.xlane.f32.xlu0 %v1392_v3  ;;  %v571_v6 = vpop.xlane.xlu0 %570 }
 0x155   : > { %v2625_v27 = vsub.f32 %v2424_v14, %v620_v4  ;;  %v2628_v10 = vsub.f32 %v2427_v16, %v1353_v5  ;;  %692 = vadd.xlane.f32.xlu1 %v691_v18  ;;  %660 = vadd.xlane.f32.xlu2 %v659_v8  ;;  %v1408_v14 = vsel %vm383_vm1, %v1368_v59, 0.0 }
 0x156   : > { %v1424_v33 = vsel %vm396_vm0, %v1408_v14, 0.0 }
 0x157   : > { %v636_v11 = vmul.f32 %v2625_v27, %v2625_v27  ;;  %v1369_v13 = vmul.f32 %v2628_v10, %v2628_v10 }
 0x159   : > { %v1304_v15 = vpop.xlane.xlu1 %1303  ;;  %v603_v17 = vpop.xlane.xlu2 %602  ;;  %v644_v20 = vsel %vm383_vm1, 0.0, %v636_v11  ;;  %v1377_v16 = vsel %vm383_vm1, 0.0, %v1369_v13  ;;  %v1409_v31 = vsel %vm383_vm1, %v1369_v13, 0.0  ;;  %v676_v37 = vsel %vm383_vm1, %v636_v11, 0.0 }
 0x15a   : > { %v613_v21 = vsel %vm383_vm1, %v603_v17, %v571_v6  ;;  %v662_v54 = vsel %vm396_vm0, %v644_v20, 0.0  ;;  %v1395_v26 = vsel %vm396_vm0, %v1377_v16, 0.0  ;;  %v1427_v39 = vsel %vm396_vm0, %v1409_v31, 0.0 }
 0x15b   : > { %v621_v23 = vmul.f32 0.03125, %v613_v21  ;;  %663 = vadd.xlane.f32.xlu0 %v662_v54  ;;  %v1336_v24 = vpop.xlane.xlu0 %1335  ;;  %v694_v43 = vsel %vm396_vm0, %v676_v37, 0.0 }
 0x15c   : > { %v1346_v25 = vsel %vm383_vm1, %v1336_v24, %v1304_v15 }
 0x15d   : > { %v2648_v28 = vsub.f32 %v2442_v29, %v621_v23  ;;  %v1354_v30 = vmul.f32 0.03125, %v1346_v25  ;;  %1425 = vadd.xlane.f32.xlu2 %v1424_v33  ;;  %1396 = vadd.xlane.f32.xlu1 %v1395_v26 }
 0x15f   : > { %v637_v32 = vmul.f32 %v2648_v28, %v2648_v28  ;;  %v2655_v34 = vsub.f32 %v2456_v38, %v1354_v30 }
 0x161   : > { %v574_v36 = vpop.xlane.xlu1 %573  ;;  %v645_v29 = vsel %vm383_vm1, 0.0, %v637_v32  ;;  %v1370_v44 = vmul.f32 %v2655_v34, %v2655_v34  ;;  %v1307_v45 = vpop.xlane.xlu2 %1306  ;;  %v677_v47 = vsel %vm383_vm1, %v637_v32, 0.0 }
 0x162   : > { %v665_v51 = vsel %vm396_vm0, %v645_v29, 0.0  ;;  %v697_v49 = vsel %vm396_vm0, %v677_v47, 0.0  ;;  %v2708_v29 = vld [vmem:[%s3424_s5] ss:$0 sm:$0xff] }
 0x163   : > { %1428 = vadd.xlane.f32.xlu0 %v1427_v39  ;;  %v606_v41 = vpop.xlane.xlu0 %605  ;;  %v1410_v46 = vsel %vm383_vm1, %v1370_v44, 0.0  ;;  %v1378_v56 = vsel %vm383_vm1, 0.0, %v1370_v44 }
 0x164   : > { %v614_v42 = vsel %vm383_vm1, %v606_v41, %v574_v36  ;;  %v1430_v55 = vsel %vm396_vm0, %v1410_v46, 0.0  ;;  %v1398_v60 = vsel %vm396_vm0, %v1378_v56, 0.0 }
 0x165   : > { %v622_v38 = vmul.f32 0.03125, %v614_v42  ;;  %695 = vadd.xlane.f32.xlu2 %v694_v43  ;;  %666 = vadd.xlane.f32.xlu1 %v665_v51 }
 0x167   : > { %v2671_v48 = vsub.f32 %v2472_v57, %v622_v38  ;;  %v2714_v38 = vld [vmem:[%s3425_s6] ss:$0 sm:$0xff] }
 0x169   : > { %v1339_v52 = vpop.xlane.xlu1 %1338  ;;  %v638_v62 = vmul.f32 %v2671_v48, %v2671_v48 }
 0x16a   : > { %v1347_v59 = vsel %vm383_vm1, %v1339_v52, %v1307_v45 }
 0x16b   : > { %v1355_v7 = vmul.f32 0.03125, %v1347_v59  ;;  %698 = vadd.xlane.f32.xlu0 %v697_v49  ;;  %v678_v3 = vsel %vm383_vm1, %v638_v62, 0.0  ;;  %v646_v4 = vsel %vm383_vm1, 0.0, %v638_v62 }
 0x16c   : > { %v700_v5 = vsel %vm396_vm0, %v678_v3, 0.0  ;;  %v668_v6 = vsel %vm396_vm0, %v646_v4, 0.0 }
 0x16d   : > { %v2683_v57 = vsub.f32 %v2474_v58, %v1355_v7  ;;  %1431 = vadd.xlane.f32.xlu1 %v1430_v55  ;;  %1399 = vadd.xlane.f32.xlu2 %v1398_v60 }
 0x16f   : > { %v1371_v63 = vmul.f32 %v2683_v57, %v2683_v57 }
 0x171   : > { %v1379_v2 = vsel %vm383_vm1, 0.0, %v1371_v63  ;;  %v1411_v18 = vsel %vm383_vm1, %v1371_v63, 0.0 }
 0x172   : > { %v1401_v58 = vsel %vm396_vm0, %v1379_v2, 0.0  ;;  %v1433_v8 = vsel %vm396_vm0, %v1411_v18, 0.0 }
 0x173   : > { %1402 = vadd.xlane.f32.xlu0 %v1401_v58 }
 0x175   : > { %701 = vadd.xlane.f32.xlu1 %v700_v5  ;;  %669 = vadd.xlane.f32.xlu2 %v668_v6 }
 0x17d   : > { %1434 = vadd.xlane.f32.xlu2 %v1433_v8 }
 0x190   : > { %v649_v11 = vpop.xlane.xlu1 %648  ;;  %v681_v13 = vpop.xlane.xlu0 %680 }
 0x191   : > { %v703_v15 = vsel %vm383_vm1, %v681_v13, %v649_v11 }
 0x192   : > { %v711_v17 = vmul.f32 0.03125, %v703_v15 }
 0x194   : > { %v719_v20 = vadd.f32 1e-05, %v711_v17 }
 0x196   : > { %2020 = vrsqrt.f32 %v719_v20  ;;  %vm733_vm3 = vweird.f32 %v719_v20 }
 0x198   : > { %v1414_v14 = vpop.xlane.xlu1 %1413  ;;  %v1382_v16 = vpop.xlane.xlu2 %1381 }
 0x199   : > { %v1436_v21 = vsel %vm383_vm1, %v1414_v14, %v1382_v16 }
 0x19a   : > { %v1444_v54 = vmul.f32 0.03125, %v1436_v21 }
 0x19c   : > { %v2021_v23 = vpop.eup %2020  ;;  %v1452_v24 = vadd.f32 1e-05, %v1444_v54 }
 0x19d   : > { %v728_v25 = vmul.f32 %v2021_v23, %v719_v20  ;;  %vm734_vm2 = vweird.f32 %v2021_v23 }
 0x19e   : > { %2022 = vrsqrt.f32 %v1452_v24  ;;  %vm735_vm4 = vmor %vm733_vm3, %vm734_vm2  ;;  %v1385_v37 = vpop.xlane.xlu0 %1384  ;;  %vm1466_vm6 = vweird.f32 %v1452_v24 }
 0x19f   : > { %v729_v33 = vmul.f32 %v2021_v23, %v728_v25 }
 0x1a1   : > { %v730_v26 = vmul.f32 0.5, %v729_v33 }
 0x1a3   : > { %v731_v30 = vsub.f32 1.5, %v730_v26 }
 0x1a4   : > { %v2023_v31 = vpop.eup %2022 }
 0x1a5   : > { %v732_v32 = vmul.f32 %v2021_v23, %v731_v30  ;;  %v1461_v36 = vmul.f32 %v2023_v31, %v1452_v24  ;;  %vm1467_vm5 = vweird.f32 %v2023_v31 }
 0x1a6   : > { %vm1468_vm7 = vmor %vm1466_vm6, %vm1467_vm5 }
 0x1a7   : > { %v736_v39 = vsel %vm735_vm4, %v2021_v23, %v732_v32  ;;  %v1462_v41 = vmul.f32 %v2023_v31, %v1461_v36 }
 0x1a8   : > { %v684_v42 = vpop.xlane.xlu1 %683  ;;  %v652_v43 = vpop.xlane.xlu2 %651  ;;  %v807_v51 = vmul.f32 %v736_v39, %v2496_v9 }
 0x1a9   : > { %v1463_v44 = vmul.f32 0.5, %v1462_v41  ;;  %v704_v45 = vsel %vm383_vm1, %v684_v42, %v652_v43 }
 0x1aa   : > { %v712_v47 = vmul.f32 0.03125, %v704_v45  ;;  %v818_v52 = vmul.f32 %v2708_v29, %v807_v51 }
 0x1ab   : > { %v1464_v46 = vsub.f32 1.5, %v1463_v44 }
 0x1ac   : > { %v720_v56 = vadd.f32 1e-05, %v712_v47  ;;  %v2720_v59 = vadd.f32 %v2714_v38, %v818_v52 }
 0x1ad   : > { %v1465_v49 = vmul.f32 %v2023_v31, %v1464_v46 }
 0x1ae   : > { %2024 = vrsqrt.f32 %v720_v56  ;;  %v655_v9 = vpop.xlane.xlu0 %654  ;;  %v869_v7 = vsel %vm383_vm1, %v2720_v59, 0.0  ;;  %v837_v55 = vsel %vm383_vm1, 0.0, %v2720_v59  ;;  %vm743_vm9 = vweird.f32 %v720_v56 }
 0x1af   : > { %v1469_v60 = vsel %vm1468_vm7, %v2023_v31, %v1465_v49  ;;  %v877_v62 = vsel %vm396_vm0, %v869_v7, 0.0  ;;  %v845_v63 = vsel %vm396_vm0, %v837_v55, 0.0 }
 0x1b0   : > { %v1417_v2 = vpop.xlane.xlu2 %1416  ;;  %v1388_v3 = vpop.xlane.xlu1 %1387  ;;  %878 = vadd.xlane.f32.xlu1 %v877_v62  ;;  %846 = vadd.xlane.f32.xlu2 %v845_v63  ;;  %v1540_v4 = vmul.f32 %v1469_v60, %v2509_v22 }
 0x1b1   : > { %v1437_v58 = vsel %vm383_vm1, %v1417_v2, %v1385_v37 }
 0x1b2   : > { %v1445_v5 = vmul.f32 0.03125, %v1437_v58  ;;  %v1548_v6 = vmul.f32 %v2708_v29, %v1540_v4 }
 0x1b4   : > { %v2025_v18 = vpop.eup %2024  ;;  %v1453_v8 = vadd.f32 1e-05, %v1445_v5  ;;  %v2735_v11 = vadd.f32 %v2714_v38, %v1548_v6 }
 0x1b5   : > { %v738_v13 = vmul.f32 %v2025_v18, %v720_v56  ;;  %vm744_vm8 = vweird.f32 %v2025_v18 }
 0x1b6   : > { %2026 = vrsqrt.f32 %v1453_v8  ;;  %v1420_v15 = vpop.xlane.xlu0 %1419  ;;  %v1596_v17 = vsel %vm383_vm1, %v2735_v11, 0.0  ;;  %v1564_v22 = vsel %vm383_vm1, 0.0, %v2735_v11  ;;  %vm745_vm10 = vmor %vm743_vm9, %vm744_vm8  ;;  %vm1476_vm12 = vweird.f32 %v1453_v8 }
 0x1b7   : > { %v739_v20 = vmul.f32 %v2025_v18, %v738_v13  ;;  %v1438_v14 = vsel %vm383_vm1, %v1420_v15, %v1388_v3  ;;  %v1604_v16 = vsel %vm396_vm0, %v1596_v17, 0.0  ;;  %v1572_v21 = vsel %vm396_vm0, %v1564_v22, 0.0 }
 0x1b8   : > { %v1446_v54 = vmul.f32 0.03125, %v1438_v14  ;;  %v687_v23 = vpop.xlane.xlu2 %686  ;;  %v658_v24 = vpop.xlane.xlu1 %657  ;;  %1605 = vadd.xlane.f32.xlu1 %v1604_v16  ;;  %1573 = vadd.xlane.f32.xlu2 %v1572_v21 }
 0x1b9   : > { %v740_v25 = vmul.f32 0.5, %v739_v20  ;;  %v705_v33 = vsel %vm383_vm1, %v687_v23, %v655_v9 }
 0x1ba   : > { %v2749_v26 = vadd.f32 1e-05, %v1446_v54  ;;  %v713_v30 = vmul.f32 0.03125, %v705_v33 }
 0x1bb   : > { %v741_v31 = vsub.f32 1.5, %v740_v25 }
 0x1bc   : > { %v2027_v32 = vpop.eup %2026  ;;  %2028 = vrsqrt.f32 %v2749_v26  ;;  %v2752_v36 = vadd.f32 1e-05, %v713_v30  ;;  %vm1486_vm15 = vweird.f32 %v2749_v26 }
 0x1bd   : > { %v742_v37 = vmul.f32 %v2025_v18, %v741_v31  ;;  %v1471_v39 = vmul.f32 %v2027_v32, %v1453_v8  ;;  %vm1477_vm11 = vweird.f32 %v2027_v32 }
 0x1be   : > { %2030 = vrsqrt.f32 %v2752_v36  ;;  %v690_v41 = vpop.xlane.xlu0 %689  ;;  %vm1478_vm13 = vmor %vm1476_vm12, %vm1477_vm11  ;;  %vm753_vm4 = vweird.f32 %v2752_v36 }
 0x1bf   : > { %v746_v42 = vsel %vm745_vm10, %v2025_v18, %v742_v37  ;;  %v1472_v43 = vmul.f32 %v2027_v32, %v1471_v39  ;;  %v706_v51 = vsel %vm383_vm1, %v690_v41, %v658_v24 }
 0x1c0   : > { %v714_v44 = vmul.f32 0.03125, %v706_v51  ;;  %v1423_v45 = vpop.xlane.xlu1 %1422  ;;  %v1391_v47 = vpop.xlane.xlu2 %1390  ;;  %v808_v52 = vmul.f32 %v746_v42, %v2532_v12 }
 0x1c1   : > { %v1473_v46 = vmul.f32 0.5, %v1472_v43  ;;  %v1439_v49 = vsel %vm383_vm1, %v1423_v45, %v1391_v47 }
 0x1c2   : > { %v2760_v56 = vpop.eup %2028  ;;  %v2762_v9 = vadd.f32 1e-05, %v714_v44  ;;  %v1447_v7 = vmul.f32 0.03125, %v1439_v49  ;;  %v819_v55 = vmul.f32 %v2708_v29, %v808_v52 }
 0x1c3   : > { %v1474_v60 = vsub.f32 1.5, %v1473_v46  ;;  %v1481_v62 = vmul.f32 %v2760_v56, %v2749_v26  ;;  %vm1487_vm14 = vweird.f32 %v2760_v56 }
 0x1c4   : > { %v2031_v63 = vpop.eup %2030  ;;  %2032 = vrsqrt.f32 %v2762_v9  ;;  %v2768_v12 = vadd.f32 1e-05, %v1447_v7  ;;  %v2771_v2 = vadd.f32 %v2714_v38, %v819_v55  ;;  %vm2797_vm3 = vmor %vm1486_vm15, %vm1487_vm14  ;;  %vm763_vm7 = vweird.f32 %v2762_v9 }
 0x1c5   : > { %v1475_v3 = vmul.f32 %v2027_v32, %v1474_v60  ;;  %v1482_v4 = vmul.f32 %v2760_v56, %v1481_v62  ;;  %v748_v58 = vmul.f32 %v2031_v63, %v2752_v36  ;;  %vm754_vm2 = vweird.f32 %v2031_v63 }
 0x1c6   : > { %2034 = vrsqrt.f32 %v2768_v12  ;;  %v1394_v5 = vpop.xlane.xlu0 %1393  ;;  %v838_v6 = vsel %vm383_vm1, 0.0, %v2771_v2  ;;  %v870_v18 = vsel %vm383_vm1, %v2771_v2, 0.0  ;;  %vm755_vm5 = vmor %vm753_vm4, %vm754_vm2  ;;  %vm1496_vm10 = vweird.f32 %v2768_v12 }
 0x1c7   : > { %v1479_v13 = vsel %vm1478_vm13, %v2027_v32, %v1475_v3  ;;  %v1483_v15 = vmul.f32 0.5, %v1482_v4  ;;  %v749_v17 = vmul.f32 %v2031_v63, %v748_v58  ;;  %v848_v8 = vsel %vm396_vm0, %v838_v6, 0.0 }
 0x1c8   : > { %v693_v22 = vpop.xlane.xlu1 %692  ;;  %v661_v20 = vpop.xlane.xlu2 %660  ;;  %849 = vadd.xlane.f32.xlu0 %v848_v8  ;;  %v880_v14 = vsel %vm396_vm0, %v870_v18, 0.0  ;;  %v1541_v16 = vmul.f32 %v1479_v13, %v2522_v35 }
 0x1c9   : > { %v1484_v21 = vsub.f32 1.5, %v1483_v15  ;;  %v750_v54 = vmul.f32 0.5, %v749_v17  ;;  %v707_v23 = vsel %vm383_vm1, %v693_v22, %v661_v20  ;;  %881 = vadd.xlane.f32.xlu2 %v880_v14 }
 0x1ca   : > { %v2788_v24 = vpop.eup %2032  ;;  %v715_v25 = vmul.f32 0.03125, %v707_v23  ;;  %v1549_v33 = vmul.f32 %v2708_v29, %v1541_v16 }
 0x1cb   : > { %v1485_v30 = vmul.f32 %v2760_v56, %v1484_v21  ;;  %v751_v31 = vsub.f32 1.5, %v750_v54  ;;  %v758_v35 = vmul.f32 %v2788_v24, %v2762_v9  ;;  %vm764_vm6 = vweird.f32 %v2788_v24 }
 0x1cc   : > { %v2795_v32 = vpop.eup %2034  ;;  %v2802_v39 = vadd.f32 1e-05, %v715_v25  ;;  %v2805_v26 = vadd.f32 %v2714_v38, %v1549_v33  ;;  %vm2833_vm8 = vmor %vm763_vm7, %vm764_vm6 }
 0x1cd   : > { %v1489_v41 = vsel %vm2797_vm3, %v2760_v56, %v1485_v30  ;;  %v752_v42 = vmul.f32 %v2031_v63, %v751_v31  ;;  %v759_v43 = vmul.f32 %v2788_v24, %v758_v35  ;;  %v1491_v51 = vmul.f32 %v2795_v32, %v2768_v12 }
 0x1ce   : > { %2036 = vrsqrt.f32 %v2802_v39  ;;  %v664_v44 = vpop.xlane.xlu0 %663  ;;  %v1597_v36 = vsel %vm383_vm1, %v2805_v26, 0.0  ;;  %v1565_v7 = vsel %vm383_vm1, 0.0, %v2805_v26  ;;  %v1542_v60 = vmul.f32 %v1489_v41, %v2550_v1 }
 0x1cf   : > { %v756_v45 = vsel %vm755_vm5, %v2031_v63, %v752_v42  ;;  %v760_v47 = vmul.f32 0.5, %v759_v43  ;;  %v1492_v52 = vmul.f32 %v2795_v32, %v1491_v51  ;;  %v1607_v46 = vsel %vm396_vm0, %v1597_v36, 0.0 }
 0x1d0   : > { %v1426_v49 = vpop.xlane.xlu2 %1425  ;;  %v1397_v56 = vpop.xlane.xlu1 %1396  ;;  %v809_v55 = vmul.f32 %v756_v45, %v2547_v61  ;;  %v1575_v4 = vsel %vm396_vm0, %v1565_v7, 0.0  ;;  %vm1497_vm9 = vweird.f32 %v2795_v32  ;;  %v1550_v22 = vmul.f32 %v2708_v29, %v1542_v60 }
 0x1d1   : > { %v761_v62 = vsub.f32 1.5, %v760_v47  ;;  %v1493_v3 = vmul.f32 0.5, %v1492_v52  ;;  %v1440_v63 = vsel %vm383_vm1, %v1426_v49, %v1394_v5  ;;  %1608 = vadd.xlane.f32.xlu2 %v1607_v46  ;;  %1576 = vadd.xlane.f32.xlu0 %v1575_v4  ;;  %vm2857_vm11 = vmor %vm1496_vm10, %vm1497_vm9  ;;  %vm773_vm13 = vweird.f32 %v2802_v39 }
 0x1d2   : > { %v1448_v58 = vmul.f32 0.03125, %v1440_v63  ;;  %v820_v6 = vmul.f32 %v2708_v29, %v809_v55  ;;  %v2872_v42 = vadd.f32 %v2714_v38, %v1550_v22 }
 0x1d3   : > { %v762_v18 = vmul.f32 %v2788_v24, %v761_v62  ;;  %v1494_v13 = vsub.f32 1.5, %v1493_v3 }
 0x1d4   : > { %v2037_v61 = vpop.eup %2036  ;;  %v2838_v5 = vadd.f32 1e-05, %v1448_v58  ;;  %v2841_v15 = vadd.f32 %v2714_v38, %v820_v6  ;;  %v1566_v49 = vsel %vm383_vm1, 0.0, %v2872_v42  ;;  %v1598_v7 = vsel %vm383_vm1, %v2872_v42, 0.0 }
 0x1d5   : > { %v766_v17 = vsel %vm2833_vm8, %v2788_v24, %v762_v18  ;;  %v1495_v9 = vmul.f32 %v2795_v32, %v1494_v13  ;;  %v768_v8 = vmul.f32 %v2037_v61, %v2802_v39  ;;  %vm774_vm12 = vweird.f32 %v2037_v61 }
 0x1d6   : > { %2038 = vrsqrt.f32 %v2838_v5  ;;  %v1429_v20 = vpop.xlane.xlu0 %1428  ;;  %v871_v14 = vsel %vm383_vm1, %v2841_v15, 0.0  ;;  %v839_v16 = vsel %vm383_vm1, 0.0, %v2841_v15  ;;  %v810_v35 = vmul.f32 %v766_v17, %v2568_v19  ;;  %vm775_vm14 = vmor %vm773_vm13, %vm774_vm12 }
 0x1d7   : > { %v769_v54 = vmul.f32 %v2037_v61, %v768_v8  ;;  %v1441_v23 = vsel %vm383_vm1, %v1429_v20, %v1397_v56  ;;  %v883_v12 = vsel %vm396_vm0, %v871_v14, 0.0  ;;  %v1499_v24 = vsel %vm2857_vm11, %v2795_v32, %v1495_v9 }
 0x1d8   : > { %v1449_v25 = vmul.f32 0.03125, %v1441_v23  ;;  %v696_v33 = vpop.xlane.xlu2 %695  ;;  %v667_v30 = vpop.xlane.xlu1 %666  ;;  %v851_v31 = vsel %vm396_vm0, %v839_v16, 0.0  ;;  %v821_v32 = vmul.f32 %v2708_v29, %v810_v35  ;;  %v1543_v45 = vmul.f32 %v1499_v24, %v2586_v0 }
 0x1d9   : > { %v770_v37 = vmul.f32 0.5, %v769_v54  ;;  %v708_v41 = vsel %vm383_vm1, %v696_v33, %v664_v44  ;;  %852 = vadd.xlane.f32.xlu1 %v851_v31  ;;  %884 = vadd.xlane.f32.xlu0 %v883_v12  ;;  %v1578_v6 = vsel %vm396_vm0, %v1566_v49, 0.0  ;;  %v1610_v17 = vsel %vm396_vm0, %v1598_v7, 0.0 }
 0x1da   : > { %v2874_v43 = vadd.f32 1e-05, %v1449_v25  ;;  %v716_v51 = vmul.f32 0.03125, %v708_v41  ;;  %v2883_v44 = vadd.f32 %v2714_v38, %v821_v32  ;;  %v1551_v56 = vmul.f32 %v2708_v29, %v1543_v45 }
 0x1db   : > { %v771_v36 = vsub.f32 1.5, %v770_v37  ;;  %vm1506_vm2 = vweird.f32 %v2838_v5 }
 0x1dc   : > { %v2039_v47 = vpop.eup %2038  ;;  %2040 = vrsqrt.f32 %v2874_v43  ;;  %v2880_v19 = vadd.f32 1e-05, %v716_v51  ;;  %v840_v0 = vsel %vm383_vm1, 0.0, %v2883_v44  ;;  %v2902_v18 = vadd.f32 %v2714_v38, %v1551_v56 }
 0x1dd   : > { %v772_v52 = vmul.f32 %v2037_v61, %v771_v36  ;;  %v1501_v46 = vmul.f32 %v2039_v47, %v2838_v5  ;;  %v854_v62 = vsel %vm396_vm0, %v840_v0, 0.0  ;;  %vm1507_vm15 = vweird.f32 %v2039_v47 }
 0x1de   : > { %2042 = vrsqrt.f32 %v2880_v19  ;;  %v699_v39 = vpop.xlane.xlu0 %698  ;;  %855 = vadd.xlane.f32.xlu2 %v854_v62  ;;  %v1567_v16 = vsel %vm383_vm1, 0.0, %v2902_v18  ;;  %v872_v33 = vsel %vm383_vm1, %v2883_v44, 0.0  ;;  %vm1508_vm3 = vmor %vm1506_vm2, %vm1507_vm15  ;;  %vm1516_vm6 = vweird.f32 %v2874_v43 }
 0x1df   : > { %v776_v55 = vsel %vm775_vm14, %v2037_v61, %v772_v52  ;;  %v1502_v60 = vmul.f32 %v2039_v47, %v1501_v46  ;;  %v709_v3 = vsel %vm383_vm1, %v699_v39, %v667_v30  ;;  %v1581_v5 = vsel %vm396_vm0, %v1567_v16, 0.0 }
 0x1e0   : > { %v717_v63 = vmul.f32 0.03125, %v709_v3  ;;  %v1432_v4 = vpop.xlane.xlu1 %1431  ;;  %v1400_v58 = vpop.xlane.xlu2 %1399  ;;  %v811_v13 = vmul.f32 %v776_v55, %v2593_v40  ;;  %v886_v36 = vsel %vm396_vm0, %v872_v33, 0.0  ;;  %vm783_vm7 = vweird.f32 %v2880_v19 }
 0x1e1   : > { %v1503_v1 = vmul.f32 0.5, %v1502_v60  ;;  %v1442_v61 = vsel %vm383_vm1, %v1432_v4, %v1400_v58  ;;  %1579 = vadd.xlane.f32.xlu1 %v1578_v6  ;;  %1611 = vadd.xlane.f32.xlu0 %v1610_v17 }
 0x1e2   : > { %v2908_v9 = vpop.eup %2040  ;;  %v2910_v8 = vadd.f32 1e-05, %v717_v63  ;;  %v1450_v22 = vmul.f32 0.03125, %v1442_v61  ;;  %v822_v20 = vmul.f32 %v2708_v29, %v811_v13 }
 0x1e3   : > { %v1504_v14 = vsub.f32 1.5, %v1503_v1  ;;  %v1511_v40 = vmul.f32 %v2908_v9, %v2874_v43  ;;  %vm1517_vm4 = vweird.f32 %v2908_v9  ;;  %v1599_v43 = vsel %vm383_vm1, %v2902_v18, 0.0 }
 0x1e4   : > { %v2043_v21 = vpop.eup %2042  ;;  %2044 = vrsqrt.f32 %v2910_v8  ;;  %v2920_v54 = vadd.f32 1e-05, %v1450_v22  ;;  %v2923_v23 = vadd.f32 %v2714_v38, %v822_v20  ;;  %vm2957_vm8 = vmor %vm1516_vm6, %vm1517_vm4  ;;  %vm793_vm11 = vweird.f32 %v2910_v8 }
 0x1e5   : > { %v1505_v12 = vmul.f32 %v2039_v47, %v1504_v14  ;;  %v1512_v24 = vmul.f32 %v2908_v9, %v1511_v40  ;;  %v778_v25 = vmul.f32 %v2043_v21, %v2880_v19  ;;  %vm784_vm5 = vweird.f32 %v2043_v21 }
 0x1e6   : > { %2046 = vrsqrt.f32 %v2920_v54  ;;  %v841_v30 = vsel %vm383_vm1, 0.0, %v2923_v23  ;;  %1582 = vadd.xlane.f32.xlu2 %v1581_v5  ;;  %v873_v55 = vsel %vm383_vm1, %v2923_v23, 0.0  ;;  %vm785_vm9 = vmor %vm783_vm7, %vm784_vm5  ;;  %v1403_v14 = vpop.xlane.xlu0 %1402  ;;  %v1613_v40 = vsel %vm396_vm0, %v1599_v43, 0.0 }
 0x1e7   : > { %v1509_v31 = vsel %vm1508_vm3, %v2039_v47, %v1505_v12  ;;  %v1513_v35 = vmul.f32 0.5, %v1512_v24  ;;  %v779_v37 = vmul.f32 %v2043_v21, %v778_v25  ;;  %v857_v41 = vsel %vm396_vm0, %v841_v30, 0.0 }
 0x1e8   : > { %v702_v51 = vpop.xlane.xlu1 %701  ;;  %v670_v32 = vpop.xlane.xlu2 %669  ;;  %v1544_v45 = vmul.f32 %v1509_v31, %v2605_v53  ;;  %v889_v13 = vsel %vm396_vm0, %v873_v55, 0.0  ;;  %vm1526_vm14 = vweird.f32 %v2920_v54 }
 0x1e9   : > { %v1514_v52 = vsub.f32 1.5, %v1513_v35  ;;  %v780_v46 = vmul.f32 0.5, %v779_v37  ;;  %v710_v49 = vsel %vm383_vm1, %v702_v51, %v670_v32  ;;  %887 = vadd.xlane.f32.xlu1 %v886_v36  ;;  %858 = vadd.xlane.f32.xlu0 %v857_v41 }
 0x1ea   : > { %v2940_v56 = vpop.eup %2044  ;;  %v718_v47 = vmul.f32 0.03125, %v710_v49  ;;  %v1552_v0 = vmul.f32 %v2708_v29, %v1544_v45 }
 0x1eb   : > { %v1515_v39 = vmul.f32 %v2908_v9, %v1514_v52  ;;  %v781_v7 = vsub.f32 1.5, %v780_v46  ;;  %v788_v53 = vmul.f32 %v2940_v56, %v2910_v8  ;;  %vm794_vm10 = vweird.f32 %v2940_v56 }
 0x1ec   : > { %v2047_v60 = vpop.eup %2046  ;;  %v2952_v62 = vadd.f32 1e-05, %v718_v47  ;;  %v2955_v3 = vadd.f32 %v2714_v38, %v1552_v0  ;;  %vm2990_vm13 = vmor %vm793_vm11, %vm794_vm10 }
 0x1ed   : > { %v782_v4 = vmul.f32 %v2043_v21, %v781_v7  ;;  %v789_v58 = vmul.f32 %v2940_v56, %v788_v53  ;;  %v1521_v6 = vmul.f32 %v2047_v60, %v2920_v54  ;;  %v1519_v19 = vsel %vm2957_vm8, %v2908_v9, %v1515_v39 }
 0x1ee   : > { %2048 = vrsqrt.f32 %v2952_v62  ;;  %v1568_v1 = vsel %vm383_vm1, 0.0, %v2955_v3  ;;  %890 = vadd.xlane.f32.xlu2 %v889_v13  ;;  %vm1527_vm12 = vweird.f32 %v2047_v60  ;;  %vm803_vm3 = vweird.f32 %v2952_v62 }
 0x1ef   : > { %v786_v61 = vsel %vm785_vm9, %v2043_v21, %v782_v4  ;;  %v790_v17 = vmul.f32 0.5, %v789_v58  ;;  %v1522_v22 = vmul.f32 %v2047_v60, %v1521_v6  ;;  %v1584_v20 = vsel %vm396_vm0, %v1568_v1, 0.0  ;;  %vm1528_vm15 = vmor %vm1526_vm14, %vm1527_vm12 }
 0x1f0   : > { %v1435_v9 = vpop.xlane.xlu2 %1434  ;;  %v812_v16 = vmul.f32 %v786_v61, %v2625_v27  ;;  %v1545_v21 = vmul.f32 %v1519_v19, %v2628_v10  ;;  %v1600_v27 = vsel %vm383_vm1, %v2955_v3, 0.0 }
 0x1f1   : > { %v791_v12 = vsub.f32 1.5, %v790_v17  ;;  %v1523_v24 = vmul.f32 0.5, %v1522_v22  ;;  %v1443_v25 = vsel %vm383_vm1, %v1435_v9, %v1403_v14  ;;  %1614 = vadd.xlane.f32.xlu1 %v1613_v40  ;;  %1585 = vadd.xlane.f32.xlu0 %v1584_v20  ;;  %v1616_v45 = vsel %vm396_vm0, %v1600_v27, 0.0 }
 0x1f2   : > { %v1451_v33 = vmul.f32 0.03125, %v1443_v25  ;;  %v823_v5 = vmul.f32 %v2708_v29, %v812_v16  ;;  %v1553_v36 = vmul.f32 %v2708_v29, %v1545_v21 }
 0x1f3   : > { %v792_v30 = vmul.f32 %v2940_v56, %v791_v12  ;;  %v1524_v31 = vsub.f32 1.5, %v1523_v24 }
 0x1f4   : > { %v2049_v35 = vpop.eup %2048  ;;  %v1459_v10 = vadd.f32 1e-05, %v1451_v33  ;;  %v2996_v8 = vadd.f32 %v2714_v38, %v823_v5  ;;  %v3015_v53 = vadd.f32 %v2714_v38, %v1553_v36 }
 0x1f5   : > { %v796_v41 = vsel %vm2990_vm13, %v2940_v56, %v792_v30  ;;  %v1525_v51 = vmul.f32 %v2047_v60, %v1524_v31  ;;  %v798_v32 = vmul.f32 %v2049_v35, %v2952_v62  ;;  %vm804_vm2 = vweird.f32 %v2049_v35 }
 0x1f6   : > { %2050 = vrsqrt.f32 %v1459_v10  ;;  %v874_v54 = vsel %vm383_vm1, %v2996_v8, 0.0  ;;  %v842_v52 = vsel %vm383_vm1, 0.0, %v2996_v8  ;;  %1617 = vadd.xlane.f32.xlu2 %v1616_v45  ;;  %v813_v0 = vmul.f32 %v796_v41, %v2648_v28  ;;  %vm805_vm4 = vmor %vm803_vm3, %vm804_vm2 }
 0x1f7   : > { %v1529_v46 = vsel %vm1528_vm15, %v2047_v60, %v1525_v51  ;;  %v799_v49 = vmul.f32 %v2049_v35, %v798_v32  ;;  %v892_v56 = vsel %vm396_vm0, %v874_v54, 0.0  ;;  %v860_v47 = vsel %vm396_vm0, %v842_v52, 0.0 }
 0x1f8   : > { %v1546_v39 = vmul.f32 %v1529_v46, %v2655_v34  ;;  %v824_v55 = vmul.f32 %v2708_v29, %v813_v0  ;;  %v1569_v34 = vsel %vm383_vm1, 0.0, %v3015_v53  ;;  %v1601_v19 = vsel %vm383_vm1, %v3015_v53, 0.0 }
 0x1f9   : > { %v800_v7 = vmul.f32 0.5, %v799_v49  ;;  %861 = vadd.xlane.f32.xlu1 %v860_v47  ;;  %893 = vadd.xlane.f32.xlu0 %v892_v56  ;;  %v1587_v62 = vsel %vm396_vm0, %v1569_v34, 0.0  ;;  %v1619_v14 = vsel %vm396_vm0, %v1601_v19, 0.0  ;;  %vm1536_vm6 = vweird.f32 %v1459_v10 }
 0x1fa   : > { %v3019_v4 = vadd.f32 %v2714_v38, %v824_v55  ;;  %v1554_v58 = vmul.f32 %v2708_v29, %v1546_v39 }
 0x1fb   : > { %v801_v63 = vsub.f32 1.5, %v800_v7 }
 0x1fc   : > { %v2051_v60 = vpop.eup %2050  ;;  %v843_v43 = vsel %vm383_vm1, 0.0, %v3019_v4  ;;  %v3035_v17 = vadd.f32 %v2714_v38, %v1554_v58 }
 0x1fd   : > { %v802_v6 = vmul.f32 %v2049_v35, %v801_v63  ;;  %v1531_v28 = vmul.f32 %v2051_v60, %v1459_v10  ;;  %v863_v61 = vsel %vm396_vm0, %v843_v43, 0.0  ;;  %vm1537_vm5 = vweird.f32 %v2051_v60 }
 0x1fe   : > { %864 = vadd.xlane.f32.xlu2 %v863_v61  ;;  %v1570_v16 = vsel %vm383_vm1, 0.0, %v3035_v17  ;;  %vm1538_vm7 = vmor %vm1536_vm6, %vm1537_vm5  ;;  %v1602_v10 = vsel %vm383_vm1, %v3035_v17, 0.0 }
 0x1ff   : > { %v806_v13 = vsel %vm805_vm4, %v2049_v35, %v802_v6  ;;  %v1532_v1 = vmul.f32 %v2051_v60, %v1531_v28  ;;  %v1590_v33 = vsel %vm396_vm0, %v1570_v16, 0.0 }
 0x200   : > { %v814_v22 = vmul.f32 %v806_v13, %v2671_v48  ;;  %v875_v48 = vsel %vm383_vm1, %v3019_v4, 0.0 }
 0x201   : > { %v1533_v20 = vmul.f32 0.5, %v1532_v1  ;;  %1588 = vadd.xlane.f32.xlu1 %v1587_v62  ;;  %1620 = vadd.xlane.f32.xlu0 %v1619_v14  ;;  %v895_v30 = vsel %vm396_vm0, %v875_v48, 0.0 }
 0x202   : > { %v825_v9 = vmul.f32 %v2708_v29, %v814_v22 }
 0x203   : > { %v1534_v40 = vsub.f32 1.5, %v1533_v20 }
 0x204   : > { %v3044_v12 = vadd.f32 %v2714_v38, %v825_v9 }
 0x205   : > { %v1535_v24 = vmul.f32 %v2051_v60, %v1534_v40 }
 0x206   : > { %v844_v25 = vsel %vm383_vm1, 0.0, %v3044_v12  ;;  %1591 = vadd.xlane.f32.xlu2 %v1590_v33  ;;  %v876_v35 = vsel %vm383_vm1, %v3044_v12, 0.0 }
 0x207   : > { %v1539_v21 = vsel %vm1538_vm7, %v2051_v60, %v1535_v24  ;;  %v866_v5 = vsel %vm396_vm0, %v844_v25, 0.0 }
 0x208   : > { %v1547_v31 = vmul.f32 %v1539_v21, %v2683_v57  ;;  %v898_v57 = vsel %vm396_vm0, %v876_v35, 0.0 }
 0x209   : > { %896 = vadd.xlane.f32.xlu1 %v895_v30  ;;  %867 = vadd.xlane.f32.xlu0 %v866_v5 }
 0x20a   : > { %v1555_v27 = vmul.f32 %v2708_v29, %v1547_v31  ;;  %v1622_v29 = vsel %vm396_vm0, %v1602_v10, 0.0 }
 0x20c   : > { %v3061_v37 = vadd.f32 %v2714_v38, %v1555_v27 }
 0x20e   : > { %v1571_v41 = vsel %vm383_vm1, 0.0, %v3061_v37  ;;  %899 = vadd.xlane.f32.xlu2 %v898_v57  ;;  %v1603_v38 = vsel %vm383_vm1, %v3061_v37, 0.0 }
 0x20f   : > { %v1593_v51 = vsel %vm396_vm0, %v1571_v41, 0.0  ;;  %v1625_v32 = vsel %vm396_vm0, %v1603_v38, 0.0 }
 0x211   : > { %1623 = vadd.xlane.f32.xlu1 %v1622_v29  ;;  %1594 = vadd.xlane.f32.xlu0 %v1593_v51 }
 0x216   : > { %1626 = vadd.xlane.f32.xlu2 %v1625_v32 }
 0x223   : > { %v879_v36 = vpop.xlane.xlu1 %878  ;;  %v847_v45 = vpop.xlane.xlu2 %846 }
 0x224   : > { %v901_v54 = vsel %vm383_vm1, %v879_v36, %v847_v45 }
 0x225   : > { %v909_v52 = vmul.f32 0.03125, %v901_v54 }
 0x227   : > { %v3079_v46 = vsub.f32 %v2720_v59, %v909_v52 }
 0x229   : > { %v925_v49 = vmul.f32 %v3079_v46, %v3079_v46 }
 0x22b   : > { %v1606_v56 = vpop.xlane.xlu1 %1605  ;;  %v1574_v47 = vpop.xlane.xlu2 %1573  ;;  %v965_v0 = vsel %vm383_vm1, %v925_v49, 0.0  ;;  %v933_v39 = vsel %vm383_vm1, 0.0, %v925_v49 }
 0x22c   : > { %v1628_v7 = vsel %vm383_vm1, %v1606_v56, %v1574_v47  ;;  %v973_v55 = vsel %vm396_vm0, %v965_v0, 0.0  ;;  %v941_v63 = vsel %vm396_vm0, %v933_v39, 0.0 }
 0x22d   : > { %v1636_v59 = vmul.f32 0.03125, %v1628_v7  ;;  %974 = vadd.xlane.f32.xlu1 %v973_v55  ;;  %942 = vadd.xlane.f32.xlu0 %v941_v63 }
 0x22f   : > { %v3092_v60 = vsub.f32 %v2735_v11, %v1636_v59 }
 0x231   : > { %v1652_v58 = vmul.f32 %v3092_v60, %v3092_v60 }
 0x233   : > { %v1660_v6 = vsel %vm383_vm1, 0.0, %v1652_v58  ;;  %v1692_v28 = vsel %vm383_vm1, %v1652_v58, 0.0 }
 0x234   : > { %v1668_v34 = vsel %vm396_vm0, %v1660_v6, 0.0  ;;  %v1700_v43 = vsel %vm396_vm0, %v1692_v28, 0.0 }
 0x235   : > { %1669 = vadd.xlane.f32.xlu1 %v1668_v34  ;;  %1701 = vadd.xlane.f32.xlu0 %v1700_v43 }
 0x23b   : > { %v850_v19 = vpop.xlane.xlu0 %849 }
 0x23c   : > { %v882_v13 = vpop.xlane.xlu2 %881 }
 0x23d   : > { %v902_v11 = vsel %vm383_vm1, %v882_v13, %v850_v19 }
 0x23e   : > { %v910_v1 = vmul.f32 0.03125, %v902_v11 }
 0x240   : > { %v3105_v61 = vsub.f32 %v2771_v2, %v910_v1 }
 0x242   : > { %v926_v62 = vmul.f32 %v3105_v61, %v3105_v61 }
 0x244   : > { %v1609_v22 = vpop.xlane.xlu2 %1608  ;;  %v934_v20 = vsel %vm383_vm1, 0.0, %v926_v62  ;;  %v1577_v14 = vpop.xlane.xlu0 %1576  ;;  %v966_v2 = vsel %vm383_vm1, %v926_v62, 0.0 }
 0x245   : > { %v944_v9 = vsel %vm396_vm0, %v934_v20, 0.0  ;;  %v1629_v40 = vsel %vm383_vm1, %v1609_v22, %v1577_v14  ;;  %v976_v33 = vsel %vm396_vm0, %v966_v2, 0.0 }
 0x246   : > { %945 = vadd.xlane.f32.xlu0 %v944_v9  ;;  %v1637_v16 = vmul.f32 0.03125, %v1629_v40 }
 0x248   : > { %v3115_v24 = vsub.f32 %v2805_v26, %v1637_v16 }
 0x24a   : > { %v1653_v48 = vmul.f32 %v3115_v24, %v3115_v24 }
 0x24c   : > { %v853_v25 = vpop.xlane.xlu1 %852  ;;  %v885_v21 = vpop.xlane.xlu0 %884  ;;  %v1693_v5 = vsel %vm383_vm1, %v1653_v48, 0.0  ;;  %v1661_v30 = vsel %vm383_vm1, 0.0, %v1653_v48 }
 0x24d   : > { %v903_v26 = vsel %vm383_vm1, %v885_v21, %v853_v25  ;;  %v1703_v31 = vsel %vm396_vm0, %v1693_v5, 0.0  ;;  %v1671_v27 = vsel %vm396_vm0, %v1661_v30, 0.0 }
 0x24e   : > { %977 = vadd.xlane.f32.xlu0 %v976_v33  ;;  %v911_v35 = vmul.f32 0.03125, %v903_v26  ;;  %1704 = vadd.xlane.f32.xlu1 %v1703_v31 }
 0x24f   : > { %1672 = vadd.xlane.f32.xlu2 %v1671_v27 }
 0x250   : > { %v3131_v10 = vsub.f32 %v2841_v15, %v911_v35 }
 0x251   : > { %v856_v41 = vpop.xlane.xlu2 %855 }
 0x252   : > { %v927_v57 = vmul.f32 %v3131_v10, %v3131_v10 }
 0x254   : > { %v1580_v51 = vpop.xlane.xlu1 %1579  ;;  %v1612_v29 = vpop.xlane.xlu0 %1611  ;;  %v935_v38 = vsel %vm383_vm1, 0.0, %v927_v57  ;;  %v967_v52 = vsel %vm383_vm1, %v927_v57, 0.0 }
 0x255   : > { %v1630_v32 = vsel %vm383_vm1, %v1612_v29, %v1580_v51  ;;  %v947_v36 = vsel %vm396_vm0, %v935_v38, 0.0  ;;  %v979_v55 = vsel %vm396_vm0, %v967_v52, 0.0 }
 0x256   : > { %v1638_v45 = vmul.f32 0.03125, %v1630_v32  ;;  %948 = vadd.xlane.f32.xlu1 %v947_v36 }
 0x258   : > { %v3141_v54 = vsub.f32 %v2872_v42, %v1638_v45 }
 0x259   : > { %v1583_v15 = vpop.xlane.xlu2 %1582 }
 0x25a   : > { %v1654_v49 = vmul.f32 %v3141_v54, %v3141_v54 }
 0x25c   : > { %v888_v56 = vpop.xlane.xlu1 %887  ;;  %v859_v0 = vpop.xlane.xlu0 %858  ;;  %v1694_v39 = vsel %vm383_vm1, %v1654_v49, 0.0  ;;  %v1662_v7 = vsel %vm383_vm1, 0.0, %v1654_v49 }
 0x25d   : > { %v904_v47 = vsel %vm383_vm1, %v888_v56, %v856_v41  ;;  %v1706_v63 = vsel %vm396_vm0, %v1694_v39, 0.0  ;;  %v1674_v59 = vsel %vm396_vm0, %v1662_v7, 0.0 }
 0x25e   : > { %v912_v42 = vmul.f32 0.03125, %v904_v47  ;;  %980 = vadd.xlane.f32.xlu1 %v979_v55  ;;  %1707 = vadd.xlane.f32.xlu2 %v1706_v63 }
 0x25f   : > { %1675 = vadd.xlane.f32.xlu0 %v1674_v59 }
 0x260   : > { %v3157_v58 = vsub.f32 %v2883_v44, %v912_v42 }
 0x261   : > { %v891_v28 = vpop.xlane.xlu2 %890 }
 0x262   : > { %v928_v6 = vmul.f32 %v3157_v58, %v3157_v58  ;;  %v905_v34 = vsel %vm383_vm1, %v891_v28, %v859_v0 }
 0x263   : > { %v913_v44 = vmul.f32 0.03125, %v905_v34 }
 0x264   : > { %v1615_v43 = vpop.xlane.xlu1 %1614  ;;  %v936_v19 = vsel %vm383_vm1, 0.0, %v928_v6  ;;  %v1586_v11 = vpop.xlane.xlu0 %1585  ;;  %v968_v40 = vsel %vm383_vm1, %v928_v6, 0.0 }
 0x265   : > { %v1631_v13 = vsel %vm383_vm1, %v1615_v43, %v1583_v15  ;;  %v950_v1 = vsel %vm396_vm0, %v936_v19, 0.0  ;;  %v3172_v20 = vsub.f32 %v2923_v23, %v913_v44  ;;  %v982_v30 = vsel %vm396_vm0, %v968_v40, 0.0 }
 0x266   : > { %v1639_v62 = vmul.f32 0.03125, %v1631_v13  ;;  %951 = vadd.xlane.f32.xlu2 %v950_v1 }
 0x267   : > { %v929_v26 = vmul.f32 %v3172_v20, %v3172_v20 }
 0x268   : > { %v3169_v22 = vsub.f32 %v2902_v18, %v1639_v62 }
 0x269   : > { %v1618_v9 = vpop.xlane.xlu2 %1617  ;;  %v937_v57 = vsel %vm383_vm1, 0.0, %v929_v26  ;;  %v969_v56 = vsel %vm383_vm1, %v929_v26, 0.0 }
 0x26a   : > { %v1655_v14 = vmul.f32 %v3169_v22, %v3169_v22  ;;  %v1632_v16 = vsel %vm383_vm1, %v1618_v9, %v1586_v11  ;;  %v953_v36 = vsel %vm396_vm0, %v937_v57, 0.0  ;;  %v985_v55 = vsel %vm396_vm0, %v969_v56, 0.0 }
 0x26b   : > { %v1640_v25 = vmul.f32 0.03125, %v1632_v16 }
 0x26c   : > { %v862_v2 = vpop.xlane.xlu1 %861  ;;  %v1663_v48 = vsel %vm383_vm1, 0.0, %v1655_v14  ;;  %v1695_v18 = vsel %vm383_vm1, %v1655_v14, 0.0  ;;  %v894_v23 = vpop.xlane.xlu0 %893 }
 0x26d   : > { %v1677_v21 = vsel %vm396_vm0, %v1663_v48, 0.0  ;;  %v1709_v33 = vsel %vm396_vm0, %v1695_v18, 0.0  ;;  %v906_v5 = vsel %vm383_vm1, %v894_v23, %v862_v2  ;;  %v3192_v31 = vsub.f32 %v2955_v3, %v1640_v25 }
 0x26e   : > { %1678 = vadd.xlane.f32.xlu1 %v1677_v21  ;;  %1710 = vadd.xlane.f32.xlu0 %v1709_v33  ;;  %v914_v27 = vmul.f32 0.03125, %v906_v5 }
 0x26f   : > { %983 = vadd.xlane.f32.xlu2 %v982_v30  ;;  %v1656_v35 = vmul.f32 %v3192_v31, %v3192_v31 }
 0x270   : > { %v3197_v41 = vsub.f32 %v2996_v8, %v914_v27 }
 0x271   : > { %v865_v51 = vpop.xlane.xlu2 %864  ;;  %v1696_v29 = vsel %vm383_vm1, %v1656_v35, 0.0  ;;  %v1664_v38 = vsel %vm383_vm1, 0.0, %v1656_v35 }
 0x272   : > { %v1712_v45 = vsel %vm396_vm0, %v1696_v29, 0.0  ;;  %v1680_v15 = vsel %vm396_vm0, %v1664_v38, 0.0  ;;  %v930_v52 = vmul.f32 %v3197_v41, %v3197_v41 }
 0x274   : > { %v1589_v3 = vpop.xlane.xlu1 %1588  ;;  %v1621_v32 = vpop.xlane.xlu0 %1620  ;;  %v938_v47 = vsel %vm383_vm1, 0.0, %v930_v52  ;;  %v970_v43 = vsel %vm383_vm1, %v930_v52, 0.0 }
 0x275   : > { %v1633_v8 = vsel %vm383_vm1, %v1621_v32, %v1589_v3  ;;  %v956_v63 = vsel %vm396_vm0, %v938_v47, 0.0  ;;  %v988_v9 = vsel %vm396_vm0, %v970_v43, 0.0 }
 0x276   : > { %954 = vadd.xlane.f32.xlu0 %v953_v36  ;;  %1713 = vadd.xlane.f32.xlu1 %v1712_v45  ;;  %v1641_v49 = vmul.f32 0.03125, %v1633_v8 }
 0x277   : > { %1681 = vadd.xlane.f32.xlu2 %v1680_v15 }
 0x278   : > { %v3217_v0 = vsub.f32 %v3015_v53, %v1641_v49 }
 0x279   : > { %v1592_v39 = vpop.xlane.xlu2 %1591 }
 0x27a   : > { %v1657_v6 = vmul.f32 %v3217_v0, %v3217_v0 }
 0x27c   : > { %v897_v7 = vpop.xlane.xlu1 %896  ;;  %v868_v53 = vpop.xlane.xlu0 %867  ;;  %v1665_v13 = vsel %vm383_vm1, 0.0, %v1657_v6  ;;  %v1697_v45 = vsel %vm383_vm1, %v1657_v6, 0.0 }
 0x27d   : > { %v907_v42 = vsel %vm383_vm1, %v897_v7, %v865_v51  ;;  %v1683_v16 = vsel %vm396_vm0, %v1665_v13, 0.0  ;;  %v1715_v15 = vsel %vm396_vm0, %v1697_v45, 0.0 }
 0x27e   : > { %v915_v59 = vmul.f32 0.03125, %v907_v42  ;;  %986 = vadd.xlane.f32.xlu0 %v985_v55  ;;  %957 = vadd.xlane.f32.xlu1 %v956_v63 }
 0x280   : > { %v3226_v28 = vsub.f32 %v3019_v4, %v915_v59 }
 0x281   : > { %v900_v19 = vpop.xlane.xlu2 %899 }
 0x282   : > { %v931_v34 = vmul.f32 %v3226_v28, %v3226_v28  ;;  %v908_v11 = vsel %vm383_vm1, %v900_v19, %v868_v53 }
 0x283   : > { %v916_v4 = vmul.f32 0.03125, %v908_v11 }
 0x284   : > { %v1624_v1 = vpop.xlane.xlu1 %1623  ;;  %v939_v44 = vsel %vm383_vm1, 0.0, %v931_v34  ;;  %v971_v25 = vsel %vm383_vm1, %v931_v34, 0.0  ;;  %v1595_v21 = vpop.xlane.xlu0 %1594 }
 0x285   : > { %v1634_v62 = vsel %vm383_vm1, %v1624_v1, %v1592_v39  ;;  %v959_v14 = vsel %vm396_vm0, %v939_v44, 0.0  ;;  %v3244_v2 = vsub.f32 %v3044_v12, %v916_v4  ;;  %v991_v26 = vsel %vm396_vm0, %v971_v25, 0.0  ;;  %v3291_v4 = vld [vmem:[%s3426_s7] ss:$0 sm:$0xff] }
 0x286   : > { %v1642_v40 = vmul.f32 0.03125, %v1634_v62  ;;  %960 = vadd.xlane.f32.xlu2 %v959_v14  ;;  %989 = vadd.xlane.f32.xlu1 %v988_v9  ;;  %v3296_v9 = vld [vmem:[%s3427_s8] ss:$0 sm:$0xff] }
 0x287   : > { %1684 = vadd.xlane.f32.xlu0 %v1683_v16  ;;  %v932_v18 = vmul.f32 %v3244_v2, %v3244_v2 }
 0x288   : > { %v3247_v48 = vsub.f32 %v3035_v17, %v1642_v40 }
 0x289   : > { %v1627_v33 = vpop.xlane.xlu2 %1626  ;;  %v940_v5 = vsel %vm383_vm1, 0.0, %v932_v18  ;;  %v972_v29 = vsel %vm383_vm1, %v932_v18, 0.0 }
 0x28a   : > { %v1658_v23 = vmul.f32 %v3247_v48, %v3247_v48  ;;  %v1635_v12 = vsel %vm383_vm1, %v1627_v33, %v1595_v21  ;;  %v962_v35 = vsel %vm396_vm0, %v940_v5, 0.0 }
 0x28b   : > { %v1643_v30 = vmul.f32 0.03125, %v1635_v12 }
 0x28c   : > { %v1666_v17 = vsel %vm383_vm1, 0.0, %v1658_v23  ;;  %v1698_v8 = vsel %vm383_vm1, %v1658_v23, 0.0 }
 0x28d   : > { %v1686_v27 = vsel %vm396_vm0, %v1666_v17, 0.0  ;;  %v3265_v57 = vsub.f32 %v3061_v37, %v1643_v30  ;;  %v994_v37 = vsel %vm396_vm0, %v972_v29, 0.0  ;;  %v1718_v52 = vsel %vm396_vm0, %v1698_v8, 0.0 }
 0x28e   : > { %992 = vadd.xlane.f32.xlu2 %v991_v26  ;;  %1687 = vadd.xlane.f32.xlu1 %v1686_v27 }
 0x28f   : > { %963 = vadd.xlane.f32.xlu0 %v962_v35  ;;  %v1659_v51 = vmul.f32 %v3265_v57, %v3265_v57 }
 0x291   : > { %v1699_v38 = vsel %vm383_vm1, %v1659_v51, 0.0  ;;  %v1667_v3 = vsel %vm383_vm1, 0.0, %v1659_v51 }
 0x292   : > { %v1721_v32 = vsel %vm396_vm0, %v1699_v38, 0.0  ;;  %v1689_v36 = vsel %vm396_vm0, %v1667_v3, 0.0 }
 0x296   : > { %1722 = vadd.xlane.f32.xlu1 %v1721_v32  ;;  %1690 = vadd.xlane.f32.xlu2 %v1689_v36 }
 0x297   : > { %995 = vadd.xlane.f32.xlu0 %v994_v37 }
 0x29e   : > { %1716 = vadd.xlane.f32.xlu2 %v1715_v15 }
 0x29f   : > { %1719 = vadd.xlane.f32.xlu0 %v1718_v52 }
 0x2a0   : > { %v975_v49 = vpop.xlane.xlu1 %974  ;;  %v943_v56 = vpop.xlane.xlu0 %942 }
 0x2a1   : > { %v997_v47 = vsel %vm383_vm1, %v975_v49, %v943_v56 }
 0x2a2   : > { %v1005_v39 = vmul.f32 0.03125, %v997_v47 }
 0x2a4   : > { %v1013_v7 = vadd.f32 1e-05, %v1005_v39 }
 0x2a6   : > { %2052 = vrsqrt.f32 %v1013_v7  ;;  %vm1027_vm9 = vweird.f32 %v1013_v7 }
 0x2a8   : > { %v1670_v42 = vpop.xlane.xlu1 %1669  ;;  %v1702_v55 = vpop.xlane.xlu0 %1701 }
 0x2a9   : > { %v1724_v63 = vsel %vm383_vm1, %v1702_v55, %v1670_v42 }
 0x2aa   : > { %v1732_v59 = vmul.f32 0.03125, %v1724_v63 }
 0x2ac   : > { %v2053_v6 = vpop.eup %2052  ;;  %v1740_v53 = vadd.f32 1e-05, %v1732_v59 }
 0x2ad   : > { %v1022_v34 = vmul.f32 %v2053_v6, %v1013_v7  ;;  %vm1028_vm8 = vweird.f32 %v2053_v6 }
 0x2ae   : > { %2054 = vrsqrt.f32 %v1740_v53  ;;  %vm1029_vm10 = vmor %vm1027_vm9, %vm1028_vm8  ;;  %vm1754_vm12 = vweird.f32 %v1740_v53 }
 0x2af   : > { %v1023_v43 = vmul.f32 %v2053_v6, %v1022_v34 }
 0x2b1   : > { %v1024_v19 = vmul.f32 0.5, %v1023_v43 }
 0x2b3   : > { %v1025_v13 = vsub.f32 1.5, %v1024_v19 }
 0x2b4   : > { %v2055_v11 = vpop.eup %2054 }
 0x2b5   : > { %v1026_v1 = vmul.f32 %v2053_v6, %v1025_v13  ;;  %v1749_v44 = vmul.f32 %v2055_v11, %v1740_v53  ;;  %vm1755_vm11 = vweird.f32 %v2055_v11 }
 0x2b6   : > { %vm1756_vm13 = vmor %vm1754_vm12, %vm1755_vm11 }
 0x2b7   : > { %v1030_v62 = vsel %vm1029_vm10, %v2053_v6, %v1026_v1  ;;  %v1750_v14 = vmul.f32 %v2055_v11, %v1749_v44 }
 0x2b8   : > { %v1101_v40 = vmul.f32 %v1030_v62, %v3079_v46 }
 0x2b9   : > { %v1751_v16 = vmul.f32 0.5, %v1750_v14  ;;  %v946_v18 = vpop.xlane.xlu0 %945 }
 0x2ba   : > { %v1112_v25 = vmul.f32 %v3291_v4, %v1101_v40 }
 0x2bb   : > { %v1752_v23 = vsub.f32 1.5, %v1751_v16 }
 0x2bc   : > { %v1123_v21 = vadd.f32 %v3296_v9, %v1112_v25 }
 0x2bd   : > { %v1753_v33 = vmul.f32 %v2055_v11, %v1752_v23 }
 0x2be   : > { %1131 = vst.msk [vmem:[%s3305_s28] sm:$0xff] %vm396_vm0, %v1123_v21 }
 0x2bf   : > { %v1757_v46 = vsel %vm1756_vm13, %v2055_v11, %v1753_v33 }
 0x2c0   : > { %v1828_v5 = vmul.f32 %v1757_v46, %v3092_v60 }
 0x2c1   : > { %v978_v12 = vpop.xlane.xlu0 %977  ;;  %v1705_v30 = vpop.xlane.xlu1 %1704 }
 0x2c2   : > { %v1836_v17 = vmul.f32 %v3291_v4, %v1828_v5  ;;  %v1673_v26 = vpop.xlane.xlu2 %1672  ;;  %v998_v27 = vsel %vm383_vm1, %v978_v12, %v946_v18 }
 0x2c3   : > { %v1725_v35 = vsel %vm383_vm1, %v1705_v30, %v1673_v26  ;;  %v1006_v51 = vmul.f32 0.03125, %v998_v27 }
 0x2c4   : > { %v1844_v29 = vadd.f32 %v3296_v9, %v1836_v17  ;;  %v1733_v38 = vmul.f32 0.03125, %v1725_v35 }
 0x2c5   : > { %v1014_v3 = vadd.f32 1e-05, %v1006_v51 }
 0x2c6   : > { %1993 = vst.msk [vmem:[%s3305_s28 + $0x8] sm:$0xff] %vm396_vm0, %v1844_v29  ;;  %v1741_v32 = vadd.f32 1e-05, %v1733_v38 }
 0x2c7   : > { %2056 = vrsqrt.f32 %v1014_v3  ;;  %vm1037_vm2 = vweird.f32 %v1014_v3 }
 0x2c8   : > { %2058 = vrsqrt.f32 %v1741_v32  ;;  %vm1764_vm3 = vweird.f32 %v1741_v32 }
 0x2c9   : > { %v949_v60 = vpop.xlane.xlu1 %948 }
 0x2cd   : > { %v2057_v36 = vpop.eup %2056 }
 0x2ce   : > { %v2059_v37 = vpop.eup %2058  ;;  %v1032_v45 = vmul.f32 %v2057_v36, %v1014_v3  ;;  %vm1038_vm14 = vweird.f32 %v2057_v36 }
 0x2cf   : > { %v1759_v8 = vmul.f32 %v2059_v37, %v1741_v32  ;;  %vm1765_vm15 = vweird.f32 %v2059_v37  ;;  %vm1039_vm4 = vmor %vm1037_vm2, %vm1038_vm14 }
 0x2d0   : > { %v1033_v15 = vmul.f32 %v2057_v36, %v1032_v45  ;;  %vm1766_vm5 = vmor %vm1764_vm3, %vm1765_vm15 }
 0x2d1   : > { %v1760_v52 = vmul.f32 %v2059_v37, %v1759_v8  ;;  %v981_v56 = vpop.xlane.xlu1 %980  ;;  %v1708_v47 = vpop.xlane.xlu2 %1707 }
 0x2d2   : > { %v1034_v49 = vmul.f32 0.5, %v1033_v15  ;;  %v999_v7 = vsel %vm383_vm1, %v981_v56, %v949_v60  ;;  %v1676_v42 = vpop.xlane.xlu0 %1675 }
 0x2d3   : > { %v1761_v39 = vmul.f32 0.5, %v1760_v52  ;;  %v1007_v63 = vmul.f32 0.03125, %v999_v7  ;;  %v1726_v59 = vsel %vm383_vm1, %v1708_v47, %v1676_v42 }
 0x2d4   : > { %v1035_v55 = vsub.f32 1.5, %v1034_v49  ;;  %v1734_v53 = vmul.f32 0.03125, %v1726_v59 }
 0x2d5   : > { %v1762_v6 = vsub.f32 1.5, %v1761_v39  ;;  %v1015_v43 = vadd.f32 1e-05, %v1007_v63 }
 0x2d6   : > { %v1036_v34 = vmul.f32 %v2057_v36, %v1035_v55  ;;  %v1742_v13 = vadd.f32 1e-05, %v1734_v53 }
 0x2d7   : > { %v1763_v19 = vmul.f32 %v2059_v37, %v1762_v6  ;;  %2060 = vrsqrt.f32 %v1015_v43  ;;  %vm1047_vm8 = vweird.f32 %v1015_v43 }
 0x2d8   : > { %v1040_v11 = vsel %vm1039_vm4, %v2057_v36, %v1036_v34  ;;  %2062 = vrsqrt.f32 %v1742_v13  ;;  %vm1774_vm10 = vweird.f32 %v1742_v13 }
 0x2d9   : > { %v1767_v1 = vsel %vm1766_vm5, %v2059_v37, %v1763_v19  ;;  %v1102_v44 = vmul.f32 %v1040_v11, %v3105_v61  ;;  %v952_v14 = vpop.xlane.xlu2 %951 }
 0x2da   : > { %v1829_v62 = vmul.f32 %v1767_v1, %v3115_v24 }
 0x2db   : > { %v1113_v40 = vmul.f32 %v3291_v4, %v1102_v44 }
 0x2dc   : > { %v1837_v16 = vmul.f32 %v3291_v4, %v1829_v62 }
 0x2dd   : > { %v1124_v18 = vadd.f32 %v3296_v9, %v1113_v40  ;;  %v2061_v25 = vpop.eup %2060 }
 0x2de   : > { %v1845_v23 = vadd.f32 %v3296_v9, %v1837_v16  ;;  %v2063_v21 = vpop.eup %2062  ;;  %v1042_v33 = vmul.f32 %v2061_v25, %v1015_v43  ;;  %vm1048_vm6 = vweird.f32 %v2061_v25 }
 0x2df   : > { %1132 = vst.msk [vmem:[%s3305_s28 + $0x10] sm:$0xff] %vm396_vm0, %v1124_v18  ;;  %v1769_v61 = vmul.f32 %v2063_v21, %v1742_v13  ;;  %vm1775_vm7 = vweird.f32 %v2063_v21  ;;  %vm1049_vm9 = vmor %vm1047_vm8, %vm1048_vm6 }
 0x2e0   : > { %1994 = vst.msk [vmem:[%s3305_s28 + $0x18] sm:$0xff] %vm396_vm0, %v1845_v23  ;;  %v1043_v46 = vmul.f32 %v2061_v25, %v1042_v33  ;;  %vm1776_vm11 = vmor %vm1774_vm10, %vm1775_vm7 }
 0x2e1   : > { %v1679_v5 = vpop.xlane.xlu1 %1678  ;;  %v1711_v24 = vpop.xlane.xlu0 %1710  ;;  %v1770_v12 = vmul.f32 %v2063_v21, %v1769_v61 }
 0x2e2   : > { %v984_v17 = vpop.xlane.xlu2 %983  ;;  %v1727_v30 = vsel %vm383_vm1, %v1711_v24, %v1679_v5  ;;  %v1044_v26 = vmul.f32 0.5, %v1043_v46 }
 0x2e3   : > { %v1000_v27 = vsel %vm383_vm1, %v984_v17, %v952_v14  ;;  %v1735_v35 = vmul.f32 0.03125, %v1727_v30  ;;  %v1771_v51 = vmul.f32 0.5, %v1770_v12 }
 0x2e4   : > { %v1008_v29 = vmul.f32 0.03125, %v1000_v27  ;;  %v1045_v38 = vsub.f32 1.5, %v1044_v26 }
 0x2e5   : > { %v1743_v3 = vadd.f32 1e-05, %v1735_v35  ;;  %v1772_v32 = vsub.f32 1.5, %v1771_v51 }
 0x2e6   : > { %v1016_v60 = vadd.f32 1e-05, %v1008_v29  ;;  %v1046_v36 = vmul.f32 %v2061_v25, %v1045_v38 }
 0x2e7   : > { %2064 = vrsqrt.f32 %v1743_v3  ;;  %v1773_v37 = vmul.f32 %v2063_v21, %v1772_v32  ;;  %vm1784_vm14 = vweird.f32 %v1743_v3 }
 0x2e8   : > { %2066 = vrsqrt.f32 %v1016_v60  ;;  %v1050_v45 = vsel %vm1049_vm9, %v2061_v25, %v1046_v36  ;;  %vm1057_vm15 = vweird.f32 %v1016_v60 }
 0x2e9   : > { %v1714_v8 = vpop.xlane.xlu1 %1713  ;;  %v955_v15 = vpop.xlane.xlu0 %954  ;;  %v1103_v52 = vmul.f32 %v1050_v45, %v3131_v10  ;;  %v1777_v49 = vsel %vm1776_vm11, %v2063_v21, %v1773_v37 }
 0x2ea   : > { %v1682_v56 = vpop.xlane.xlu2 %1681  ;;  %v1830_v47 = vmul.f32 %v1777_v49, %v3141_v54 }
 0x2eb   : > { %v1728_v39 = vsel %vm383_vm1, %v1714_v8, %v1682_v56  ;;  %v1114_v7 = vmul.f32 %v3291_v4, %v1103_v52 }
 0x2ec   : > { %v1736_v42 = vmul.f32 0.03125, %v1728_v39  ;;  %v1838_v63 = vmul.f32 %v3291_v4, %v1830_v47 }
 0x2ed   : > { %v2065_v55 = vpop.eup %2064  ;;  %v1125_v6 = vadd.f32 %v3296_v9, %v1114_v7 }
 0x2ee   : > { %v2067_v59 = vpop.eup %2066  ;;  %v1779_v53 = vmul.f32 %v2065_v55, %v1743_v3  ;;  %v1744_v34 = vadd.f32 1e-05, %v1736_v42  ;;  %v1846_v10 = vadd.f32 %v3296_v9, %v1838_v63  ;;  %vm1785_vm12 = vweird.f32 %v2065_v55 }
 0x2ef   : > { %v1052_v43 = vmul.f32 %v2067_v59, %v1016_v60  ;;  %1133 = vst.msk [vmem:[%s3305_s28 + $0x20] sm:$0xff] %vm396_vm0, %v1125_v6  ;;  %vm1058_vm13 = vweird.f32 %v2067_v59  ;;  %vm1786_vm2 = vmor %vm1784_vm14, %vm1785_vm12 }
 0x2f0   : > { %v1780_v54 = vmul.f32 %v2065_v55, %v1779_v53  ;;  %2068 = vrsqrt.f32 %v1744_v34  ;;  %1995 = vst.msk [vmem:[%s3305_s28 + $0x28] sm:$0xff] %vm396_vm0, %v1846_v10  ;;  %vm1059_vm3 = vmor %vm1057_vm15, %vm1058_vm13  ;;  %vm1794_vm5 = vweird.f32 %v1744_v34 }
 0x2f1   : > { %v1053_v19 = vmul.f32 %v2067_v59, %v1052_v43  ;;  %v958_v13 = vpop.xlane.xlu1 %957  ;;  %v987_v11 = vpop.xlane.xlu0 %986 }
 0x2f2   : > { %v1781_v1 = vmul.f32 0.5, %v1780_v54  ;;  %v1001_v44 = vsel %vm383_vm1, %v987_v11, %v955_v15 }
 0x2f3   : > { %v1054_v62 = vmul.f32 0.5, %v1053_v19  ;;  %v1009_v14 = vmul.f32 0.03125, %v1001_v44 }
 0x2f4   : > { %v1782_v40 = vsub.f32 1.5, %v1781_v1 }
 0x2f5   : > { %v1055_v16 = vsub.f32 1.5, %v1054_v62  ;;  %v1017_v18 = vadd.f32 1e-05, %v1009_v14 }
 0x2f6   : > { %v2069_v25 = vpop.eup %2068  ;;  %v1783_v23 = vmul.f32 %v2065_v55, %v1782_v40 }
 0x2f7   : > { %v1056_v21 = vmul.f32 %v2067_v59, %v1055_v16  ;;  %v1789_v33 = vmul.f32 %v2069_v25, %v1744_v34  ;;  %2070 = vrsqrt.f32 %v1017_v18  ;;  %vm1795_vm4 = vweird.f32 %v2069_v25 }
 0x2f8   : > { %v1787_v61 = vsel %vm1786_vm2, %v2065_v55, %v1783_v23  ;;  %vm1796_vm6 = vmor %vm1794_vm5, %vm1795_vm4  ;;  %vm1067_vm8 = vweird.f32 %v1017_v18 }
 0x2f9   : > { %v1060_v46 = vsel %vm1059_vm3, %v2067_v59, %v1056_v21  ;;  %v1831_v5 = vmul.f32 %v1787_v61, %v3169_v22  ;;  %v1790_v24 = vmul.f32 %v2069_v25, %v1789_v33  ;;  %v961_v12 = vpop.xlane.xlu2 %960  ;;  %v990_v17 = vpop.xlane.xlu1 %989 }
 0x2fa   : > { %v1104_v30 = vmul.f32 %v1060_v46, %v3157_v58  ;;  %v1002_v26 = vsel %vm383_vm1, %v990_v17, %v958_v13  ;;  %v3355_v27 = vpop.xlane.xlu0 %1684 }
 0x2fb   : > { %v1839_v35 = vmul.f32 %v3291_v4, %v1831_v5  ;;  %v1791_v51 = vmul.f32 0.5, %v1790_v24  ;;  %v1010_v29 = vmul.f32 0.03125, %v1002_v26 }
 0x2fc   : > { %v1115_v38 = vmul.f32 %v3291_v4, %v1104_v30 }
 0x2fd   : > { %v2071_v3 = vpop.eup %2070  ;;  %v1847_v22 = vadd.f32 %v3296_v9, %v1839_v35  ;;  %v1792_v32 = vsub.f32 1.5, %v1791_v51  ;;  %v1018_v60 = vadd.f32 1e-05, %v1010_v29 }
 0x2fe   : > { %v1126_v58 = vadd.f32 %v3296_v9, %v1115_v38  ;;  %v1062_v36 = vmul.f32 %v2071_v3, %v1017_v18  ;;  %vm1068_vm7 = vweird.f32 %v2071_v3 }
 0x2ff   : > { %1996 = vst.msk [vmem:[%s3305_s28 + $0x38] sm:$0xff] %vm396_vm0, %v1847_v22  ;;  %v1793_v37 = vmul.f32 %v2069_v25, %v1792_v32  ;;  %2072 = vrsqrt.f32 %v1018_v60  ;;  %vm1069_vm9 = vmor %vm1067_vm8, %vm1068_vm7  ;;  %vm1077_vm11 = vweird.f32 %v1018_v60 }
 0x300   : > { %1134 = vst.msk [vmem:[%s3305_s28 + $0x30] sm:$0xff] %vm396_vm0, %v1126_v58  ;;  %v1063_v45 = vmul.f32 %v2071_v3, %v1062_v36 }
 0x301   : > { %v1797_v8 = vsel %vm1796_vm6, %v2069_v25, %v1793_v37  ;;  %v993_v15 = vpop.xlane.xlu2 %992  ;;  %v1688_v52 = vpop.xlane.xlu1 %1687 }
 0x302   : > { %v1832_v49 = vmul.f32 %v1797_v8, %v3192_v31  ;;  %v1064_v56 = vmul.f32 0.5, %v1063_v45  ;;  %v1003_v47 = vsel %vm383_vm1, %v993_v15, %v961_v12  ;;  %v964_v39 = vpop.xlane.xlu0 %963 }
 0x303   : > { %v1011_v7 = vmul.f32 0.03125, %v1003_v47 }
 0x304   : > { %v1840_v42 = vmul.f32 %v3291_v4, %v1832_v49  ;;  %v1065_v55 = vsub.f32 1.5, %v1064_v56 }
 0x305   : > { %v2073_v63 = vpop.eup %2072  ;;  %v1019_v59 = vadd.f32 1e-05, %v1011_v7 }
 0x306   : > { %v1848_v6 = vadd.f32 %v3296_v9, %v1840_v42  ;;  %v1066_v53 = vmul.f32 %v2071_v3, %v1065_v55  ;;  %v1072_v34 = vmul.f32 %v2073_v63, %v1018_v60  ;;  %vm1078_vm10 = vweird.f32 %v2073_v63 }
 0x307   : > { %2074 = vrsqrt.f32 %v1019_v59  ;;  %vm1079_vm12 = vmor %vm1077_vm11, %vm1078_vm10  ;;  %vm1087_vm14 = vweird.f32 %v1019_v59 }
 0x308   : > { %1997 = vst.msk [vmem:[%s3305_s28 + $0x48] sm:$0xff] %vm396_vm0, %v1848_v6  ;;  %v1070_v31 = vsel %vm1069_vm9, %v2071_v3, %v1066_v53  ;;  %v1073_v10 = vmul.f32 %v2073_v63, %v1072_v34 }
 0x309   : > { %v1105_v43 = vmul.f32 %v1070_v31, %v3172_v20  ;;  %v1723_v54 = vpop.xlane.xlu1 %1722  ;;  %v1691_v19 = vpop.xlane.xlu2 %1690 }
 0x30a   : > { %v1074_v13 = vmul.f32 0.5, %v1073_v10  ;;  %v1731_v11 = vsel %vm383_vm1, %v1723_v54, %v1691_v19  ;;  %v996_v1 = vpop.xlane.xlu0 %995 }
 0x30b   : > { %v1116_v44 = vmul.f32 %v3291_v4, %v1105_v43  ;;  %v1739_v62 = vmul.f32 0.03125, %v1731_v11  ;;  %v1004_v14 = vsel %vm383_vm1, %v996_v1, %v964_v39 }
 0x30c   : > { %v1075_v40 = vsub.f32 1.5, %v1074_v13  ;;  %v1012_v16 = vmul.f32 0.03125, %v1004_v14 }
 0x30d   : > { %v2075_v18 = vpop.eup %2074  ;;  %v1127_v20 = vadd.f32 %v3296_v9, %v1116_v44  ;;  %v1747_v25 = vadd.f32 1e-05, %v1739_v62 }
 0x30e   : > { %v1076_v23 = vmul.f32 %v2073_v63, %v1075_v40  ;;  %v1082_v21 = vmul.f32 %v2075_v18, %v1019_v59  ;;  %v1020_v33 = vadd.f32 1e-05, %v1012_v16  ;;  %vm1088_vm13 = vweird.f32 %v2075_v18 }
 0x30f   : > { %1135 = vst.msk [vmem:[%s3305_s28 + $0x40] sm:$0xff] %vm396_vm0, %v1127_v20  ;;  %2076 = vrsqrt.f32 %v1747_v25  ;;  %vm1089_vm15 = vmor %vm1087_vm14, %vm1088_vm13  ;;  %vm1824_vm3 = vweird.f32 %v1747_v25 }
 0x310   : > { %v1080_v61 = vsel %vm1079_vm12, %v2073_v63, %v1076_v23  ;;  %v1083_v46 = vmul.f32 %v2075_v18, %v1082_v21  ;;  %2078 = vrsqrt.f32 %v1020_v33  ;;  %vm1097_vm5 = vweird.f32 %v1020_v33 }
 0x311   : > { %v1106_v5 = vmul.f32 %v1080_v61, %v3197_v41  ;;  %v1717_v24 = vpop.xlane.xlu2 %1716 }
 0x312   : > { %v1084_v12 = vmul.f32 0.5, %v1083_v46  ;;  %v1729_v17 = vsel %vm383_vm1, %v1717_v24, %v3355_v27  ;;  %v1720_v30 = vpop.xlane.xlu0 %1719 }
 0x313   : > { %v1117_v26 = vmul.f32 %v3291_v4, %v1106_v5  ;;  %v1737_v35 = vmul.f32 0.03125, %v1729_v17  ;;  %v1730_v51 = vsel %vm383_vm1, %v1720_v30, %v1688_v52 }
 0x314   : > { %v1085_v29 = vsub.f32 1.5, %v1084_v12  ;;  %v1738_v38 = vmul.f32 0.03125, %v1730_v51 }
 0x315   : > { %v2077_v3 = vpop.eup %2076  ;;  %v1128_v41 = vadd.f32 %v3296_v9, %v1117_v26  ;;  %v1745_v22 = vadd.f32 1e-05, %v1737_v35 }
 0x316   : > { %v2079_v32 = vpop.eup %2078  ;;  %v1086_v60 = vmul.f32 %v2075_v18, %v1085_v29  ;;  %v1819_v58 = vmul.f32 %v2077_v3, %v1747_v25  ;;  %v1746_v27 = vadd.f32 1e-05, %v1738_v38  ;;  %vm1825_vm1 = vweird.f32 %v2077_v3 }
 0x317   : > { %1136 = vst.msk [vmem:[%s3305_s28 + $0x50] sm:$0xff] %vm396_vm0, %v1128_v41  ;;  %v1092_v36 = vmul.f32 %v2079_v32, %v1020_v33  ;;  %2080 = vrsqrt.f32 %v1745_v22  ;;  %vm1098_vm2 = vweird.f32 %v2079_v32  ;;  %vm1826_vm4 = vmor %vm1824_vm3, %vm1825_vm1  ;;  %vm1804_vm9 = vweird.f32 %v1745_v22 }
 0x318   : > { %v1090_v37 = vsel %vm1089_vm15, %v2075_v18, %v1086_v60  ;;  %v1820_v50 = vmul.f32 %v2077_v3, %v1819_v58  ;;  %2082 = vrsqrt.f32 %v1746_v27  ;;  %vm1099_vm6 = vmor %vm1097_vm5, %vm1098_vm2  ;;  %vm1814_vm11 = vweird.f32 %v1746_v27 }
 0x319   : > { %v1107_v45 = vmul.f32 %v1090_v37, %v3226_v28  ;;  %v1093_v8 = vmul.f32 %v2079_v32, %v1092_v36 }
 0x31a   : > { %v1821_v15 = vmul.f32 0.5, %v1820_v50 }
 0x31b   : > { %v1118_v52 = vmul.f32 %v3291_v4, %v1107_v45  ;;  %v1094_v49 = vmul.f32 0.5, %v1093_v8 }
 0x31c   : > { %v1822_v56 = vsub.f32 1.5, %v1821_v15 }
 0x31d   : > { %v2081_v47 = vpop.eup %2080  ;;  %v1129_v39 = vadd.f32 %v3296_v9, %v1118_v52  ;;  %v1095_v7 = vsub.f32 1.5, %v1094_v49 }
 0x31e   : > { %v2083_v42 = vpop.eup %2082  ;;  %v1823_v55 = vmul.f32 %v2077_v3, %v1822_v56  ;;  %v1799_v63 = vmul.f32 %v2081_v47, %v1745_v22  ;;  %vm1805_vm7 = vweird.f32 %v2081_v47 }
 0x31f   : > { %1137 = vst.msk [vmem:[%s3305_s28 + $0x60] sm:$0xff] %vm396_vm0, %v1129_v39  ;;  %v1096_v28 = vmul.f32 %v2079_v32, %v1095_v7  ;;  %v1809_v59 = vmul.f32 %v2083_v42, %v1746_v27  ;;  %vm1815_vm8 = vweird.f32 %v2083_v42  ;;  %vm1806_vm10 = vmor %vm1804_vm9, %vm1805_vm7 }
 0x320   : > { %v1827_v6 = vsel %vm1826_vm4, %v2077_v3, %v1823_v55  ;;  %v1800_v53 = vmul.f32 %v2081_v47, %v1799_v63  ;;  %vm1816_vm12 = vmor %vm1814_vm11, %vm1815_vm8 }
 0x321   : > { %v1835_v34 = vmul.f32 %v1827_v6, %v3265_v57  ;;  %v1100_v31 = vsel %vm1099_vm6, %v2079_v32, %v1096_v28  ;;  %v1810_v10 = vmul.f32 %v2083_v42, %v1809_v59 }
 0x322   : > { %v1108_v43 = vmul.f32 %v1100_v31, %v3244_v2  ;;  %v1801_v54 = vmul.f32 0.5, %v1800_v53 }
 0x323   : > { %v1843_v19 = vmul.f32 %v3291_v4, %v1835_v34  ;;  %v1811_v13 = vmul.f32 0.5, %v1810_v10 }
 0x324   : > { %v1119_v11 = vmul.f32 %v3291_v4, %v1108_v43  ;;  %v1802_v1 = vsub.f32 1.5, %v1801_v54 }
 0x325   : > { %v1851_v44 = vadd.f32 %v3296_v9, %v1843_v19  ;;  %v1812_v62 = vsub.f32 1.5, %v1811_v13 }
 0x326   : > { %v1130_v57 = vadd.f32 %v3296_v9, %v1119_v11  ;;  %v1803_v14 = vmul.f32 %v2081_v47, %v1802_v1 }
 0x327   : > { %2000 = vst.msk [vmem:[%s3305_s28 + $0x78] sm:$0xff] %vm396_vm0, %v1851_v44  ;;  %v1813_v2 = vmul.f32 %v2083_v42, %v1812_v62 }
 0x328   : > { %1138 = vst.msk [vmem:[%s3305_s28 + $0x70] sm:$0xff] %vm396_vm0, %v1130_v57  ;;  %v1807_v40 = vsel %vm1806_vm10, %v2081_v47, %v1803_v14 }
 0x329   : > { %v1833_v16 = vmul.f32 %v1807_v40, %v3217_v0  ;;  %v1817_v18 = vsel %vm1816_vm12, %v2083_v42, %v1813_v2 }
 0x32a   : > { %v1834_v20 = vmul.f32 %v1817_v18, %v3247_v48 }
 0x32b   : > { %v1841_v25 = vmul.f32 %v3291_v4, %v1833_v16 }
 0x32c   : > { %v1842_v23 = vmul.f32 %v3291_v4, %v1834_v20 }
 0x32d   : > { %v1849_v21 = vadd.f32 %v3296_v9, %v1841_v25 }
 0x32e   : > { %v1850_v33 = vadd.f32 %v3296_v9, %v1842_v23 }
 0x32f   : > { %1998 = vst.msk [vmem:[%s3305_s28 + $0x58] sm:$0xff] %vm396_vm0, %v1849_v21 }
 0x330   : > { %1999 = vst.msk [vmem:[%s3305_s28 + $0x68] sm:$0xff] %vm396_vm0, %v1850_v33 }
 0x331 PF: > { %s19_s30 = sadd.s32 1, %s2090_s30  }
 0x332   : > { %p16_p5 = scmp.ge.s32.totalorder %s19_s30, 4  }
 0x334   :  { %18 = sbr.rel (!%p16_p5) target bundleno = 1 (0x1), region = 93 }

</bundles_post_ra>
